<compile_context>
chip_gen: v7x
topology: tpu7x:2x2x1
jax: 0.10.0
libtpu: 0.0.40
codegen_flags: <defaults>
</compile_context>

<pallas_src>
import numpy as np

import jax
import jax.numpy as jnp
from jax.experimental import pallas as pl
from jax.experimental.pallas import tpu as pltpu


# ----------------------------------------------------------------------------
# Fused BasicBlock kernel.  One grid step == one batch image.
# Layout inside the kernel: every image tensor is (H, W*C) with W*C lane-dense.
# A 3x3 "SAME" conv is:   out = sum_dy  xpad[dy:dy+H, :] @ B[dy]
# where xpad is the row-padded (H+2, W*Cin) image and B[dy] is the
# (W*Cin, W*Cout) block-Toeplitz matrix that encodes the dx taps + W padding.
# ----------------------------------------------------------------------------
def _make_basic_block_kernel(H, WC):
    def conv3(x2d, b_ref, scale, bias, xp_ref):
        # write the interior; border rows 0 and H+1 were zeroed once per step
        xp_ref[1:H + 1, :] = x2d
        acc = jnp.dot(xp_ref[0:H, :], b_ref[0],
                      preferred_element_type=jnp.float32)
        acc = acc + jnp.dot(xp_ref[1:H + 1, :], b_ref[1],
                            preferred_element_type=jnp.float32)
        acc = acc + jnp.dot(xp_ref[2:H + 2, :], b_ref[2],
                            preferred_element_type=jnp.float32)
        return acc * scale + bias                      # folded BN (affine)

    def kernel(t1_ref, t2_ref, d_ref,
               b1w_ref, b2w_ref, b2dw_ref,
               s1_ref, o1b_ref, s2_ref, o2b_ref, s2d_ref, odb_ref,
               o1_ref, o2_ref, od_ref, xp_ref):
        # zero the 1-row halo at top/bottom of the padded scratch (once/step)
        xp_ref[0:1, :] = jnp.zeros((1, WC), jnp.float32)
        xp_ref[H + 1:H + 2, :] = jnp.zeros((1, WC), jnp.float32)

        t1 = t1_ref[0].astype(jnp.float32)             # (H, W*C)
        t2 = t2_ref[0].astype(jnp.float32)
        d = d_ref[0].astype(jnp.float32)
        s1, b1 = s1_ref[...], o1b_ref[...]             # (1, W*C)
        s2, b2 = s2_ref[...], o2b_ref[...]
        s2d, b2d = s2d_ref[...], odb_ref[...]

        # branch = relu(bn1(conv1(x)))   -- stays in registers/VMEM
        br1 = jnp.maximum(conv3(t1, b1w_ref, s1, b1, xp_ref), 0.0)
        br2 = jnp.maximum(conv3(t2, b1w_ref, s1, b1, xp_ref), 0.0)

        # out_t1 = relu(bn2(conv2(br1)) + t1)
        o1 = jnp.maximum(conv3(br1, b2w_ref, s2, b2, xp_ref) + t1, 0.0)
        # out_t2 = relu(bn2(conv2(br2)) + t2)
        o2 = jnp.maximum(conv3(br2, b2w_ref, s2, b2, xp_ref) + t2, 0.0)
        # out_d  = relu(bn2_diff(conv2_diff(br2 - br1)) + d)
        od = jnp.maximum(conv3(br2 - br1, b2dw_ref, s2d, b2d, xp_ref) + d, 0.0)

        o1_ref[0] = o1.astype(o1_ref.dtype)
        o2_ref[0] = o2.astype(o2_ref.dtype)
        od_ref[0] = od.astype(od_ref.dtype)

    return kernel


# ----------------------------------------------------------------------------
# Block-Toeplitz weight construction (wrapper side, one einsum per conv).
# w: (3, 3, Cin, Cout) HWIO  ->  B: (3, W*Cin, W*Cout) with
# B[dy, s*Cin+cin, w*Cout+c] = w[dy, dx, cin, c]   where s = w + dx - 1 in [0,W)
# (columns that would read outside [0, W) simply have no entry == zero pad).
# ----------------------------------------------------------------------------
def _toeplitz_weights(w, W):
    Cin, Cout = w.shape[2], w.shape[3]
    dx = np.arange(3).reshape(3, 1, 1)
    s = np.arange(W).reshape(1, W, 1)
    wcol = np.arange(W).reshape(1, 1, W)
    T = (s == wcol + dx - 1).astype(np.float32)        # (3, W, W)
    B = jnp.einsum("dsw,ydic->ysiwc", T, w)            # (3, W, Cin, W, Cout)
    return B.reshape(3, W * Cin, W * Cout)


# ----------------------------------------------------------------------------
# BasicBlock forward (final=False, downsample=None, stride=1), NHWC tensors.
# ----------------------------------------------------------------------------
def basic_block_forward(params, t1, t2, d):
    N, H, W, C = t1.shape
    WC = W * C

    B1 = _toeplitz_weights(params["w1"], W)
    B2 = _toeplitz_weights(params["w2"], W)
    B2d = _toeplitz_weights(params["w2_diff"], W)

    wide = lambda v: jnp.tile(v, W).reshape(1, WC)      # per-(w,c) lane vector

    args = (
        t1.reshape(N, H, WC), t2.reshape(N, H, WC), d.reshape(N, H, WC),
        B1, B2, B2d,
        wide(params["s1"]), wide(params["b1"]),
        wide(params["s2"]), wide(params["b2"]),
        wide(params["s2_diff"]), wide(params["b2_diff"]),
    )

    img_spec = pl.BlockSpec((1, H, WC), lambda n: (n, 0, 0))
    wspec = lambda B: pl.BlockSpec(B.shape, lambda n: (0, 0, 0))
    vspec = pl.BlockSpec((1, WC), lambda n: (0, 0))

    in_specs = [img_spec, img_spec, img_spec,
                wspec(B1), wspec(B2), wspec(B2d)] + [vspec] * 6
    out_spec = pl.BlockSpec((1, H, WC), lambda n: (n, 0, 0))
    out_shape = tuple(jax.ShapeDtypeStruct((N, H, WC), t1.dtype)
                      for _ in range(3))

    kernel = _make_basic_block_kernel(H, WC)
    o1, o2, od = pl.pallas_call(
        kernel,
        out_shape=out_shape,
        grid=(N,),
        in_specs=in_specs,
        out_specs=(out_spec, out_spec, out_spec),
        scratch_shapes=[pltpu.VMEM((H + 2, WC), jnp.float32)],
        compiler_params=pltpu.CompilerParams(
            dimension_semantics=("parallel",)),
    )(*args)

    rs = lambda x: x.reshape(N, H, W, C)
    return rs(o1), rs(o2), rs(od)


# ----------------------------------------------------------------------------
# Parameter construction (deterministic, synthetic) + BN folding.
# ----------------------------------------------------------------------------
def fold_bn(gamma, beta, mean, var, eps=1e-5):
    scale = gamma / jnp.sqrt(var + eps)
    bias = beta - mean * scale
    return scale, bias


def init_basic_block_params(key, inplanes, planes):
    ks = jax.random.split(key, 9)

    def conv_w(k, cin, cout):
        return (jax.random.normal(k, (3, 3, cin, cout), jnp.float32)
                * (1.0 / (3.0 * (cin ** 0.5))))

    def bn_p(k, c):
        k1, k2 = jax.random.split(k)
        gamma = 1.0 + 0.1 * jax.random.normal(k1, (c,), jnp.float32)
        beta = 0.1 * jax.random.normal(k2, (c,), jnp.float32)
        mean = jnp.zeros((c,), jnp.float32)
        var = jnp.ones((c,), jnp.float32)
        return fold_bn(gamma, beta, mean, var)

    params = {
        "w1": conv_w(ks[0], inplanes, planes),
        "w2": conv_w(ks[1], planes, planes),
        "w2_diff": conv_w(ks[2], planes, planes),
    }
    params["s1"], params["b1"] = bn_p(ks[3], planes)
    params["s2"], params["b2"] = bn_p(ks[4], planes)
    params["s2_diff"], params["b2_diff"] = bn_p(ks[5], planes)
    return params


# ----------------------------------------------------------------------------
# Pure-JAX reference (for correctness check).
# ----------------------------------------------------------------------------
def _conv_ref(x, w):
    return jax.lax.conv_general_dilated(
        x, w, window_strides=(1, 1), padding="SAME",
        dimension_numbers=("NHWC", "HWIO", "NHWC"))


def basic_block_ref(params, t1, t2, d):
    bn = lambda x, s, b: x * s + b
    relu = lambda x: jnp.maximum(x, 0.0)
    b_t1 = relu(bn(_conv_ref(t1, params["w1"]), params["s1"], params["b1"]))
    b_t2 = relu(bn(_conv_ref(t2, params["w1"]), params["s1"], params["b1"]))
    out_t1 = relu(bn(_conv_ref(b_t1, params["w2"]), params["s2"], params["b2"]) + t1)
    out_t2 = relu(bn(_conv_ref(b_t2, params["w2"]), params["s2"], params["b2"]) + t2)
    out_d = relu(bn(_conv_ref(b_t2 - b_t1, params["w2_diff"]),
                    params["s2_diff"], params["b2_diff"]) + d)
    return out_t1, out_t2, out_d


if __name__ == "__main__":
    key = jax.random.PRNGKey(0)
    k_t1, k_t2, k_d, k_p = jax.random.split(key, 4)

    N, H, W, C = 2, 16, 16, 8          # inplanes == planes == 8, W*C = 128
    t1 = jax.random.normal(k_t1, (N, H, W, C), jnp.float32)
    t2 = jax.random.normal(k_t2, (N, H, W, C), jnp.float32)
    d = jax.random.normal(k_d, (N, H, W, C), jnp.float32)

    params = init_basic_block_params(k_p, C, C)

    fwd = jax.jit(basic_block_forward)
    out_t1, out_t2, out_d = jax.block_until_ready(fwd(params, t1, t2, d))

    # correctness check against pure-JAX reference
    r_t1, r_t2, r_d = basic_block_ref(params, t1, t2, d)
    assert jnp.allclose(out_t1, r_t1, atol=1e-4, rtol=1e-4)
    assert jnp.allclose(out_t2, r_t2, atol=1e-4, rtol=1e-4)
    assert jnp.allclose(out_d, r_d, atol=1e-4, rtol=1e-4)

    print("KERNEL_OK")
</pallas_src>

<mosaic_0001>
module attributes {stable_mosaic.version = 11 : i64} {
  func.func @kernel(%arg0: i32, %arg1: memref<1x16x128xf32, #tpu.memory_space<vmem>>, %arg2: memref<1x16x128xf32, #tpu.memory_space<vmem>>, %arg3: memref<1x16x128xf32, #tpu.memory_space<vmem>>, %arg4: memref<3x128x128xf32, #tpu.memory_space<vmem>>, %arg5: memref<3x128x128xf32, #tpu.memory_space<vmem>>, %arg6: memref<3x128x128xf32, #tpu.memory_space<vmem>>, %arg7: memref<1x128xf32, #tpu.memory_space<vmem>>, %arg8: memref<1x128xf32, #tpu.memory_space<vmem>>, %arg9: memref<1x128xf32, #tpu.memory_space<vmem>>, %arg10: memref<1x128xf32, #tpu.memory_space<vmem>>, %arg11: memref<1x128xf32, #tpu.memory_space<vmem>>, %arg12: memref<1x128xf32, #tpu.memory_space<vmem>>, %arg13: memref<1x16x128xf32, #tpu.memory_space<vmem>>, %arg14: memref<1x16x128xf32, #tpu.memory_space<vmem>>, %arg15: memref<1x16x128xf32, #tpu.memory_space<vmem>>, %arg16: memref<18x128xf32, #tpu.memory_space<vmem>>) attributes {dimension_semantics = [#tpu.dimension_semantics<parallel>], iteration_bounds = array<i64: 2>, scalar_prefetch = 0 : i64, scratch_operands = 1 : i64, tpu.core_type = #tpu.core_type<tc>, window_params = [{transform_indices = @transform_0, window_bounds = array<i64: 1, 16, 128>}, {transform_indices = @transform_1, window_bounds = array<i64: 1, 16, 128>}, {transform_indices = @transform_2, window_bounds = array<i64: 1, 16, 128>}, {pipeline_mode = #tpu.pipeline_mode<synchronous>, transform_indices = @transform_3, window_bounds = array<i64: 3, 128, 128>}, {pipeline_mode = #tpu.pipeline_mode<synchronous>, transform_indices = @transform_4, window_bounds = array<i64: 3, 128, 128>}, {pipeline_mode = #tpu.pipeline_mode<synchronous>, transform_indices = @transform_5, window_bounds = array<i64: 3, 128, 128>}, {pipeline_mode = #tpu.pipeline_mode<synchronous>, transform_indices = @transform_6, window_bounds = array<i64: 1, 128>}, {pipeline_mode = #tpu.pipeline_mode<synchronous>, transform_indices = @transform_7, window_bounds = array<i64: 1, 128>}, {pipeline_mode = #tpu.pipeline_mode<synchronous>, transform_indices = @transform_8, window_bounds = array<i64: 1, 128>}, {pipeline_mode = #tpu.pipeline_mode<synchronous>, transform_indices = @transform_9, window_bounds = array<i64: 1, 128>}, {pipeline_mode = #tpu.pipeline_mode<synchronous>, transform_indices = @transform_10, window_bounds = array<i64: 1, 128>}, {pipeline_mode = #tpu.pipeline_mode<synchronous>, transform_indices = @transform_11, window_bounds = array<i64: 1, 128>}, {transform_indices = @transform_12, window_bounds = array<i64: 1, 16, 128>}, {transform_indices = @transform_13, window_bounds = array<i64: 1, 16, 128>}, {transform_indices = @transform_14, window_bounds = array<i64: 1, 16, 128>}]} {
    %cst = arith.constant 0.000000e+00 : f32
    %0 = vector.broadcast %cst : f32 to vector<1x128xf32>
    %c0 = arith.constant 0 : index
    %c0_0 = arith.constant 0 : index
    %1 = vector.load %arg16[%c0, %c0_0] : memref<18x128xf32, #tpu.memory_space<vmem>>, vector<1x128xf32>
    tpu.vector_store %arg16[%c0, %c0_0], %0 {strides = array<i32>} : memref<18x128xf32, #tpu.memory_space<vmem>>, vector<1x128xf32>,
    %cst_1 = arith.constant 0.000000e+00 : f32
    %2 = vector.broadcast %cst_1 : f32 to vector<1x128xf32>
    %c17 = arith.constant 17 : index
    %c0_2 = arith.constant 0 : index
    %3 = vector.load %arg16[%c17, %c0_2] : memref<18x128xf32, #tpu.memory_space<vmem>>, vector<1x128xf32>
    tpu.vector_store %arg16[%c17, %c0_2], %2 {strides = array<i32>} : memref<18x128xf32, #tpu.memory_space<vmem>>, vector<1x128xf32>,
    %c0_3 = arith.constant 0 : index
    %c0_4 = arith.constant 0 : index
    %c0_5 = arith.constant 0 : index
    %4 = vector.load %arg1[%c0_3, %c0_4, %c0_5] : memref<1x16x128xf32, #tpu.memory_space<vmem>>, vector<1x16x128xf32>
    %5 = vector.shape_cast %4 : vector<1x16x128xf32> to vector<16x128xf32>
    %c0_6 = arith.constant 0 : index
    %c0_7 = arith.constant 0 : index
    %c0_8 = arith.constant 0 : index
    %6 = vector.load %arg2[%c0_6, %c0_7, %c0_8] : memref<1x16x128xf32, #tpu.memory_space<vmem>>, vector<1x16x128xf32>
    %7 = vector.shape_cast %6 : vector<1x16x128xf32> to vector<16x128xf32>
    %c0_9 = arith.constant 0 : index
    %c0_10 = arith.constant 0 : index
    %c0_11 = arith.constant 0 : index
    %8 = vector.load %arg3[%c0_9, %c0_10, %c0_11] : memref<1x16x128xf32, #tpu.memory_space<vmem>>, vector<1x16x128xf32>
    %9 = vector.shape_cast %8 : vector<1x16x128xf32> to vector<16x128xf32>
    %c0_12 = arith.constant 0 : index
    %c0_13 = arith.constant 0 : index
    %10 = vector.load %arg7[%c0_12, %c0_13] : memref<1x128xf32, #tpu.memory_space<vmem>>, vector<1x128xf32>
    %c0_14 = arith.constant 0 : index
    %c0_15 = arith.constant 0 : index
    %11 = vector.load %arg8[%c0_14, %c0_15] : memref<1x128xf32, #tpu.memory_space<vmem>>, vector<1x128xf32>
    %c0_16 = arith.constant 0 : index
    %c0_17 = arith.constant 0 : index
    %12 = vector.load %arg9[%c0_16, %c0_17] : memref<1x128xf32, #tpu.memory_space<vmem>>, vector<1x128xf32>
    %c0_18 = arith.constant 0 : index
    %c0_19 = arith.constant 0 : index
    %13 = vector.load %arg10[%c0_18, %c0_19] : memref<1x128xf32, #tpu.memory_space<vmem>>, vector<1x128xf32>
    %c0_20 = arith.constant 0 : index
    %c0_21 = arith.constant 0 : index
    %14 = vector.load %arg11[%c0_20, %c0_21] : memref<1x128xf32, #tpu.memory_space<vmem>>, vector<1x128xf32>
    %c0_22 = arith.constant 0 : index
    %c0_23 = arith.constant 0 : index
    %15 = vector.load %arg12[%c0_22, %c0_23] : memref<1x128xf32, #tpu.memory_space<vmem>>, vector<1x128xf32>
    %c1 = arith.constant 1 : index
    %c0_24 = arith.constant 0 : index
    %16 = vector.load %arg16[%c1, %c0_24] : memref<18x128xf32, #tpu.memory_space<vmem>>, vector<16x128xf32>
    tpu.vector_store %arg16[%c1, %c0_24], %5 {strides = array<i32>} : memref<18x128xf32, #tpu.memory_space<vmem>>, vector<16x128xf32>,
    %c0_25 = arith.constant 0 : index
    %c0_26 = arith.constant 0 : index
    %17 = vector.load %arg16[%c0_25, %c0_26] : memref<18x128xf32, #tpu.memory_space<vmem>>, vector<16x128xf32>
    %c0_27 = arith.constant 0 : index
    %c0_28 = arith.constant 0 : index
    %c0_29 = arith.constant 0 : index
    %18 = vector.load %arg4[%c0_27, %c0_28, %c0_29] : memref<3x128x128xf32, #tpu.memory_space<vmem>>, vector<1x128x128xf32>
    %19 = vector.shape_cast %18 : vector<1x128x128xf32> to vector<128x128xf32>
    %cst_30 = arith.constant dense<0.000000e+00> : vector<16x128xf32>
    %20 = tpu.matmul %17, %19, %cst_30 {dimension_numbers = #tpu.dot_dimension_numbers<[1], [0], [0], [1], [0, 0, 1, 1], [], []>} : vector<16x128xf32>, vector<128x128xf32>, vector<16x128xf32> -> vector<16x128xf32>
    %c1_31 = arith.constant 1 : index
    %c0_32 = arith.constant 0 : index
    %21 = vector.load %arg16[%c1_31, %c0_32] : memref<18x128xf32, #tpu.memory_space<vmem>>, vector<16x128xf32>
    %c1_33 = arith.constant 1 : index
    %c0_34 = arith.constant 0 : index
    %c0_35 = arith.constant 0 : index
    %22 = vector.load %arg4[%c1_33, %c0_34, %c0_35] : memref<3x128x128xf32, #tpu.memory_space<vmem>>, vector<1x128x128xf32>
    %23 = vector.shape_cast %22 : vector<1x128x128xf32> to vector<128x128xf32>
    %cst_36 = arith.constant dense<0.000000e+00> : vector<16x128xf32>
    %24 = tpu.matmul %21, %23, %cst_36 {dimension_numbers = #tpu.dot_dimension_numbers<[1], [0], [0], [1], [0, 0, 1, 1], [], []>} : vector<16x128xf32>, vector<128x128xf32>, vector<16x128xf32> -> vector<16x128xf32>
    %25 = arith.addf %20, %24 : vector<16x128xf32>
    %c2 = arith.constant 2 : index
    %c0_37 = arith.constant 0 : index
    %26 = vector.load %arg16[%c2, %c0_37] : memref<18x128xf32, #tpu.memory_space<vmem>>, vector<16x128xf32>
    %c2_38 = arith.constant 2 : index
    %c0_39 = arith.constant 0 : index
    %c0_40 = arith.constant 0 : index
    %27 = vector.load %arg4[%c2_38, %c0_39, %c0_40] : memref<3x128x128xf32, #tpu.memory_space<vmem>>, vector<1x128x128xf32>
    %28 = vector.shape_cast %27 : vector<1x128x128xf32> to vector<128x128xf32>
    %cst_41 = arith.constant dense<0.000000e+00> : vector<16x128xf32>
    %29 = tpu.matmul %26, %28, %cst_41 {dimension_numbers = #tpu.dot_dimension_numbers<[1], [0], [0], [1], [0, 0, 1, 1], [], []>} : vector<16x128xf32>, vector<128x128xf32>, vector<16x128xf32> -> vector<16x128xf32>
    %30 = arith.addf %25, %29 : vector<16x128xf32>
    %31 = vector.broadcast %10 : vector<1x128xf32> to vector<16x128xf32>
    %32 = arith.mulf %30, %31 : vector<16x128xf32>
    %33 = vector.broadcast %11 : vector<1x128xf32> to vector<16x128xf32>
    %34 = arith.addf %32, %33 : vector<16x128xf32>
    %cst_42 = arith.constant 0.000000e+00 : f32
    %35 = vector.broadcast %cst_42 : f32 to vector<16x128xf32>
    %36 = arith.maximumf %34, %35 : vector<16x128xf32>
    %c1_43 = arith.constant 1 : index
    %c0_44 = arith.constant 0 : index
    %37 = vector.load %arg16[%c1_43, %c0_44] : memref<18x128xf32, #tpu.memory_space<vmem>>, vector<16x128xf32>
    tpu.vector_store %arg16[%c1_43, %c0_44], %7 {strides = array<i32>} : memref<18x128xf32, #tpu.memory_space<vmem>>, vector<16x128xf32>,
    %c0_45 = arith.constant 0 : index
    %c0_46 = arith.constant 0 : index
    %38 = vector.load %arg16[%c0_45, %c0_46] : memref<18x128xf32, #tpu.memory_space<vmem>>, vector<16x128xf32>
    %c0_47 = arith.constant 0 : index
    %c0_48 = arith.constant 0 : index
    %c0_49 = arith.constant 0 : index
    %39 = vector.load %arg4[%c0_47, %c0_48, %c0_49] : memref<3x128x128xf32, #tpu.memory_space<vmem>>, vector<1x128x128xf32>
    %40 = vector.shape_cast %39 : vector<1x128x128xf32> to vector<128x128xf32>
    %cst_50 = arith.constant dense<0.000000e+00> : vector<16x128xf32>
    %41 = tpu.matmul %38, %40, %cst_50 {dimension_numbers = #tpu.dot_dimension_numbers<[1], [0], [0], [1], [0, 0, 1, 1], [], []>} : vector<16x128xf32>, vector<128x128xf32>, vector<16x128xf32> -> vector<16x128xf32>
    %c1_51 = arith.constant 1 : index
    %c0_52 = arith.constant 0 : index
    %42 = vector.load %arg16[%c1_51, %c0_52] : memref<18x128xf32, #tpu.memory_space<vmem>>, vector<16x128xf32>
    %c1_53 = arith.constant 1 : index
    %c0_54 = arith.constant 0 : index
    %c0_55 = arith.constant 0 : index
    %43 = vector.load %arg4[%c1_53, %c0_54, %c0_55] : memref<3x128x128xf32, #tpu.memory_space<vmem>>, vector<1x128x128xf32>
    %44 = vector.shape_cast %43 : vector<1x128x128xf32> to vector<128x128xf32>
    %cst_56 = arith.constant dense<0.000000e+00> : vector<16x128xf32>
    %45 = tpu.matmul %42, %44, %cst_56 {dimension_numbers = #tpu.dot_dimension_numbers<[1], [0], [0], [1], [0, 0, 1, 1], [], []>} : vector<16x128xf32>, vector<128x128xf32>, vector<16x128xf32> -> vector<16x128xf32>
    %46 = arith.addf %41, %45 : vector<16x128xf32>
    %c2_57 = arith.constant 2 : index
    %c0_58 = arith.constant 0 : index
    %47 = vector.load %arg16[%c2_57, %c0_58] : memref<18x128xf32, #tpu.memory_space<vmem>>, vector<16x128xf32>
    %c2_59 = arith.constant 2 : index
    %c0_60 = arith.constant 0 : index
    %c0_61 = arith.constant 0 : index
    %48 = vector.load %arg4[%c2_59, %c0_60, %c0_61] : memref<3x128x128xf32, #tpu.memory_space<vmem>>, vector<1x128x128xf32>
    %49 = vector.shape_cast %48 : vector<1x128x128xf32> to vector<128x128xf32>
    %cst_62 = arith.constant dense<0.000000e+00> : vector<16x128xf32>
    %50 = tpu.matmul %47, %49, %cst_62 {dimension_numbers = #tpu.dot_dimension_numbers<[1], [0], [0], [1], [0, 0, 1, 1], [], []>} : vector<16x128xf32>, vector<128x128xf32>, vector<16x128xf32> -> vector<16x128xf32>
    %51 = arith.addf %46, %50 : vector<16x128xf32>
    %52 = vector.broadcast %10 : vector<1x128xf32> to vector<16x128xf32>
    %53 = arith.mulf %51, %52 : vector<16x128xf32>
    %54 = vector.broadcast %11 : vector<1x128xf32> to vector<16x128xf32>
    %55 = arith.addf %53, %54 : vector<16x128xf32>
    %cst_63 = arith.constant 0.000000e+00 : f32
    %56 = vector.broadcast %cst_63 : f32 to vector<16x128xf32>
    %57 = arith.maximumf %55, %56 : vector<16x128xf32>
    %c1_64 = arith.constant 1 : index
    %c0_65 = arith.constant 0 : index
    %58 = vector.load %arg16[%c1_64, %c0_65] : memref<18x128xf32, #tpu.memory_space<vmem>>, vector<16x128xf32>
    tpu.vector_store %arg16[%c1_64, %c0_65], %36 {strides = array<i32>} : memref<18x128xf32, #tpu.memory_space<vmem>>, vector<16x128xf32>,
    %c0_66 = arith.constant 0 : index
    %c0_67 = arith.constant 0 : index
    %59 = vector.load %arg16[%c0_66, %c0_67] : memref<18x128xf32, #tpu.memory_space<vmem>>, vector<16x128xf32>
    %c0_68 = arith.constant 0 : index
    %c0_69 = arith.constant 0 : index
    %c0_70 = arith.constant 0 : index
    %60 = vector.load %arg5[%c0_68, %c0_69, %c0_70] : memref<3x128x128xf32, #tpu.memory_space<vmem>>, vector<1x128x128xf32>
    %61 = vector.shape_cast %60 : vector<1x128x128xf32> to vector<128x128xf32>
    %cst_71 = arith.constant dense<0.000000e+00> : vector<16x128xf32>
    %62 = tpu.matmul %59, %61, %cst_71 {dimension_numbers = #tpu.dot_dimension_numbers<[1], [0], [0], [1], [0, 0, 1, 1], [], []>} : vector<16x128xf32>, vector<128x128xf32>, vector<16x128xf32> -> vector<16x128xf32>
    %c1_72 = arith.constant 1 : index
    %c0_73 = arith.constant 0 : index
    %63 = vector.load %arg16[%c1_72, %c0_73] : memref<18x128xf32, #tpu.memory_space<vmem>>, vector<16x128xf32>
    %c1_74 = arith.constant 1 : index
    %c0_75 = arith.constant 0 : index
    %c0_76 = arith.constant 0 : index
    %64 = vector.load %arg5[%c1_74, %c0_75, %c0_76] : memref<3x128x128xf32, #tpu.memory_space<vmem>>, vector<1x128x128xf32>
    %65 = vector.shape_cast %64 : vector<1x128x128xf32> to vector<128x128xf32>
    %cst_77 = arith.constant dense<0.000000e+00> : vector<16x128xf32>
    %66 = tpu.matmul %63, %65, %cst_77 {dimension_numbers = #tpu.dot_dimension_numbers<[1], [0], [0], [1], [0, 0, 1, 1], [], []>} : vector<16x128xf32>, vector<128x128xf32>, vector<16x128xf32> -> vector<16x128xf32>
    %67 = arith.addf %62, %66 : vector<16x128xf32>
    %c2_78 = arith.constant 2 : index
    %c0_79 = arith.constant 0 : index
    %68 = vector.load %arg16[%c2_78, %c0_79] : memref<18x128xf32, #tpu.memory_space<vmem>>, vector<16x128xf32>
    %c2_80 = arith.constant 2 : index
    %c0_81 = arith.constant 0 : index
    %c0_82 = arith.constant 0 : index
    %69 = vector.load %arg5[%c2_80, %c0_81, %c0_82] : memref<3x128x128xf32, #tpu.memory_space<vmem>>, vector<1x128x128xf32>
    %70 = vector.shape_cast %69 : vector<1x128x128xf32> to vector<128x128xf32>
    %cst_83 = arith.constant dense<0.000000e+00> : vector<16x128xf32>
    %71 = tpu.matmul %68, %70, %cst_83 {dimension_numbers = #tpu.dot_dimension_numbers<[1], [0], [0], [1], [0, 0, 1, 1], [], []>} : vector<16x128xf32>, vector<128x128xf32>, vector<16x128xf32> -> vector<16x128xf32>
    %72 = arith.addf %67, %71 : vector<16x128xf32>
    %73 = vector.broadcast %12 : vector<1x128xf32> to vector<16x128xf32>
    %74 = arith.mulf %72, %73 : vector<16x128xf32>
    %75 = vector.broadcast %13 : vector<1x128xf32> to vector<16x128xf32>
    %76 = arith.addf %74, %75 : vector<16x128xf32>
    %77 = arith.addf %76, %5 : vector<16x128xf32>
    %cst_84 = arith.constant 0.000000e+00 : f32
    %78 = vector.broadcast %cst_84 : f32 to vector<16x128xf32>
    %79 = arith.maximumf %77, %78 : vector<16x128xf32>
    %c1_85 = arith.constant 1 : index
    %c0_86 = arith.constant 0 : index
    %80 = vector.load %arg16[%c1_85, %c0_86] : memref<18x128xf32, #tpu.memory_space<vmem>>, vector<16x128xf32>
    tpu.vector_store %arg16[%c1_85, %c0_86], %57 {strides = array<i32>} : memref<18x128xf32, #tpu.memory_space<vmem>>, vector<16x128xf32>,
    %c0_87 = arith.constant 0 : index
    %c0_88 = arith.constant 0 : index
    %81 = vector.load %arg16[%c0_87, %c0_88] : memref<18x128xf32, #tpu.memory_space<vmem>>, vector<16x128xf32>
    %c0_89 = arith.constant 0 : index
    %c0_90 = arith.constant 0 : index
    %c0_91 = arith.constant 0 : index
    %82 = vector.load %arg5[%c0_89, %c0_90, %c0_91] : memref<3x128x128xf32, #tpu.memory_space<vmem>>, vector<1x128x128xf32>
    %83 = vector.shape_cast %82 : vector<1x128x128xf32> to vector<128x128xf32>
    %cst_92 = arith.constant dense<0.000000e+00> : vector<16x128xf32>
    %84 = tpu.matmul %81, %83, %cst_92 {dimension_numbers = #tpu.dot_dimension_numbers<[1], [0], [0], [1], [0, 0, 1, 1], [], []>} : vector<16x128xf32>, vector<128x128xf32>, vector<16x128xf32> -> vector<16x128xf32>
    %c1_93 = arith.constant 1 : index
    %c0_94 = arith.constant 0 : index
    %85 = vector.load %arg16[%c1_93, %c0_94] : memref<18x128xf32, #tpu.memory_space<vmem>>, vector<16x128xf32>
    %c1_95 = arith.constant 1 : index
    %c0_96 = arith.constant 0 : index
    %c0_97 = arith.constant 0 : index
    %86 = vector.load %arg5[%c1_95, %c0_96, %c0_97] : memref<3x128x128xf32, #tpu.memory_space<vmem>>, vector<1x128x128xf32>
    %87 = vector.shape_cast %86 : vector<1x128x128xf32> to vector<128x128xf32>
    %cst_98 = arith.constant dense<0.000000e+00> : vector<16x128xf32>
    %88 = tpu.matmul %85, %87, %cst_98 {dimension_numbers = #tpu.dot_dimension_numbers<[1], [0], [0], [1], [0, 0, 1, 1], [], []>} : vector<16x128xf32>, vector<128x128xf32>, vector<16x128xf32> -> vector<16x128xf32>
    %89 = arith.addf %84, %88 : vector<16x128xf32>
    %c2_99 = arith.constant 2 : index
    %c0_100 = arith.constant 0 : index
    %90 = vector.load %arg16[%c2_99, %c0_100] : memref<18x128xf32, #tpu.memory_space<vmem>>, vector<16x128xf32>
    %c2_101 = arith.constant 2 : index
    %c0_102 = arith.constant 0 : index
    %c0_103 = arith.constant 0 : index
    %91 = vector.load %arg5[%c2_101, %c0_102, %c0_103] : memref<3x128x128xf32, #tpu.memory_space<vmem>>, vector<1x128x128xf32>
    %92 = vector.shape_cast %91 : vector<1x128x128xf32> to vector<128x128xf32>
    %cst_104 = arith.constant dense<0.000000e+00> : vector<16x128xf32>
    %93 = tpu.matmul %90, %92, %cst_104 {dimension_numbers = #tpu.dot_dimension_numbers<[1], [0], [0], [1], [0, 0, 1, 1], [], []>} : vector<16x128xf32>, vector<128x128xf32>, vector<16x128xf32> -> vector<16x128xf32>
    %94 = arith.addf %89, %93 : vector<16x128xf32>
    %95 = vector.broadcast %12 : vector<1x128xf32> to vector<16x128xf32>
    %96 = arith.mulf %94, %95 : vector<16x128xf32>
    %97 = vector.broadcast %13 : vector<1x128xf32> to vector<16x128xf32>
    %98 = arith.addf %96, %97 : vector<16x128xf32>
    %99 = arith.addf %98, %7 : vector<16x128xf32>
    %cst_105 = arith.constant 0.000000e+00 : f32
    %100 = vector.broadcast %cst_105 : f32 to vector<16x128xf32>
    %101 = arith.maximumf %99, %100 : vector<16x128xf32>
    %102 = arith.subf %57, %36 : vector<16x128xf32>
    %c1_106 = arith.constant 1 : index
    %c0_107 = arith.constant 0 : index
    %103 = vector.load %arg16[%c1_106, %c0_107] : memref<18x128xf32, #tpu.memory_space<vmem>>, vector<16x128xf32>
    tpu.vector_store %arg16[%c1_106, %c0_107], %102 {strides = array<i32>} : memref<18x128xf32, #tpu.memory_space<vmem>>, vector<16x128xf32>,
    %c0_108 = arith.constant 0 : index
    %c0_109 = arith.constant 0 : index
    %104 = vector.load %arg16[%c0_108, %c0_109] : memref<18x128xf32, #tpu.memory_space<vmem>>, vector<16x128xf32>
    %c0_110 = arith.constant 0 : index
    %c0_111 = arith.constant 0 : index
    %c0_112 = arith.constant 0 : index
    %105 = vector.load %arg6[%c0_110, %c0_111, %c0_112] : memref<3x128x128xf32, #tpu.memory_space<vmem>>, vector<1x128x128xf32>
    %106 = vector.shape_cast %105 : vector<1x128x128xf32> to vector<128x128xf32>
    %cst_113 = arith.constant dense<0.000000e+00> : vector<16x128xf32>
    %107 = tpu.matmul %104, %106, %cst_113 {dimension_numbers = #tpu.dot_dimension_numbers<[1], [0], [0], [1], [0, 0, 1, 1], [], []>} : vector<16x128xf32>, vector<128x128xf32>, vector<16x128xf32> -> vector<16x128xf32>
    %c1_114 = arith.constant 1 : index
    %c0_115 = arith.constant 0 : index
    %108 = vector.load %arg16[%c1_114, %c0_115] : memref<18x128xf32, #tpu.memory_space<vmem>>, vector<16x128xf32>
    %c1_116 = arith.constant 1 : index
    %c0_117 = arith.constant 0 : index
    %c0_118 = arith.constant 0 : index
    %109 = vector.load %arg6[%c1_116, %c0_117, %c0_118] : memref<3x128x128xf32, #tpu.memory_space<vmem>>, vector<1x128x128xf32>
    %110 = vector.shape_cast %109 : vector<1x128x128xf32> to vector<128x128xf32>
    %cst_119 = arith.constant dense<0.000000e+00> : vector<16x128xf32>
    %111 = tpu.matmul %108, %110, %cst_119 {dimension_numbers = #tpu.dot_dimension_numbers<[1], [0], [0], [1], [0, 0, 1, 1], [], []>} : vector<16x128xf32>, vector<128x128xf32>, vector<16x128xf32> -> vector<16x128xf32>
    %112 = arith.addf %107, %111 : vector<16x128xf32>
    %c2_120 = arith.constant 2 : index
    %c0_121 = arith.constant 0 : index
    %113 = vector.load %arg16[%c2_120, %c0_121] : memref<18x128xf32, #tpu.memory_space<vmem>>, vector<16x128xf32>
    %c2_122 = arith.constant 2 : index
    %c0_123 = arith.constant 0 : index
    %c0_124 = arith.constant 0 : index
    %114 = vector.load %arg6[%c2_122, %c0_123, %c0_124] : memref<3x128x128xf32, #tpu.memory_space<vmem>>, vector<1x128x128xf32>
    %115 = vector.shape_cast %114 : vector<1x128x128xf32> to vector<128x128xf32>
    %cst_125 = arith.constant dense<0.000000e+00> : vector<16x128xf32>
    %116 = tpu.matmul %113, %115, %cst_125 {dimension_numbers = #tpu.dot_dimension_numbers<[1], [0], [0], [1], [0, 0, 1, 1], [], []>} : vector<16x128xf32>, vector<128x128xf32>, vector<16x128xf32> -> vector<16x128xf32>
    %117 = arith.addf %112, %116 : vector<16x128xf32>
    %118 = vector.broadcast %14 : vector<1x128xf32> to vector<16x128xf32>
    %119 = arith.mulf %117, %118 : vector<16x128xf32>
    %120 = vector.broadcast %15 : vector<1x128xf32> to vector<16x128xf32>
    %121 = arith.addf %119, %120 : vector<16x128xf32>
    %122 = arith.addf %121, %9 : vector<16x128xf32>
    %cst_126 = arith.constant 0.000000e+00 : f32
    %123 = vector.broadcast %cst_126 : f32 to vector<16x128xf32>
    %124 = arith.maximumf %122, %123 : vector<16x128xf32>
    %c0_127 = arith.constant 0 : index
    %c0_128 = arith.constant 0 : index
    %c0_129 = arith.constant 0 : index
    %125 = vector.load %arg13[%c0_127, %c0_128, %c0_129] : memref<1x16x128xf32, #tpu.memory_space<vmem>>, vector<1x16x128xf32>
    %126 = vector.shape_cast %125 : vector<1x16x128xf32> to vector<16x128xf32>
    %127 = vector.shape_cast %79 : vector<16x128xf32> to vector<1x16x128xf32>
    tpu.vector_store %arg13[%c0_127, %c0_128, %c0_129], %127 {strides = array<i32>} : memref<1x16x128xf32, #tpu.memory_space<vmem>>, vector<1x16x128xf32>,
    %c0_130 = arith.constant 0 : index
    %c0_131 = arith.constant 0 : index
    %c0_132 = arith.constant 0 : index
    %128 = vector.load %arg14[%c0_130, %c0_131, %c0_132] : memref<1x16x128xf32, #tpu.memory_space<vmem>>, vector<1x16x128xf32>
    %129 = vector.shape_cast %128 : vector<1x16x128xf32> to vector<16x128xf32>
    %130 = vector.shape_cast %101 : vector<16x128xf32> to vector<1x16x128xf32>
    tpu.vector_store %arg14[%c0_130, %c0_131, %c0_132], %130 {strides = array<i32>} : memref<1x16x128xf32, #tpu.memory_space<vmem>>, vector<1x16x128xf32>,
    %c0_133 = arith.constant 0 : index
    %c0_134 = arith.constant 0 : index
    %c0_135 = arith.constant 0 : index
    %131 = vector.load %arg15[%c0_133, %c0_134, %c0_135] : memref<1x16x128xf32, #tpu.memory_space<vmem>>, vector<1x16x128xf32>
    %132 = vector.shape_cast %131 : vector<1x16x128xf32> to vector<16x128xf32>
    %133 = vector.shape_cast %124 : vector<16x128xf32> to vector<1x16x128xf32>
    tpu.vector_store %arg15[%c0_133, %c0_134, %c0_135], %133 {strides = array<i32>} : memref<1x16x128xf32, #tpu.memory_space<vmem>>, vector<1x16x128xf32>,
    return
  }
  func.func @transform_0(%arg0: i32) -> (i32, i32, i32) {
    %c0_i32 = arith.constant 0 : i32
    %c0_i32_0 = arith.constant 0 : i32
    %c0_i32_1 = arith.constant 0 : i32
    return %arg0, %c0_i32, %c0_i32_0 : i32, i32, i32
  }
  func.func @transform_1(%arg0: i32) -> (i32, i32, i32) {
    %c0_i32 = arith.constant 0 : i32
    %c0_i32_0 = arith.constant 0 : i32
    %c0_i32_1 = arith.constant 0 : i32
    return %arg0, %c0_i32, %c0_i32_0 : i32, i32, i32
  }
  func.func @transform_2(%arg0: i32) -> (i32, i32, i32) {
    %c0_i32 = arith.constant 0 : i32
    %c0_i32_0 = arith.constant 0 : i32
    %c0_i32_1 = arith.constant 0 : i32
    return %arg0, %c0_i32, %c0_i32_0 : i32, i32, i32
  }
  func.func @transform_3(%arg0: i32) -> (i32, i32, i32) {
    %c0_i32 = arith.constant 0 : i32
    %c0_i32_0 = arith.constant 0 : i32
    %c0_i32_1 = arith.constant 0 : i32
    %c0_i32_2 = arith.constant 0 : i32
    return %c0_i32, %c0_i32_0, %c0_i32_1 : i32, i32, i32
  }
  func.func @transform_4(%arg0: i32) -> (i32, i32, i32) {
    %c0_i32 = arith.constant 0 : i32
    %c0_i32_0 = arith.constant 0 : i32
    %c0_i32_1 = arith.constant 0 : i32
    %c0_i32_2 = arith.constant 0 : i32
    return %c0_i32, %c0_i32_0, %c0_i32_1 : i32, i32, i32
  }
  func.func @transform_5(%arg0: i32) -> (i32, i32, i32) {
    %c0_i32 = arith.constant 0 : i32
    %c0_i32_0 = arith.constant 0 : i32
    %c0_i32_1 = arith.constant 0 : i32
    %c0_i32_2 = arith.constant 0 : i32
    return %c0_i32, %c0_i32_0, %c0_i32_1 : i32, i32, i32
  }
  func.func @transform_6(%arg0: i32) -> (i32, i32) {
    %c0_i32 = arith.constant 0 : i32
    %c0_i32_0 = arith.constant 0 : i32
    %c0_i32_1 = arith.constant 0 : i32
    return %c0_i32, %c0_i32_0 : i32, i32
  }
  func.func @transform_7(%arg0: i32) -> (i32, i32) {
    %c0_i32 = arith.constant 0 : i32
    %c0_i32_0 = arith.constant 0 : i32
    %c0_i32_1 = arith.constant 0 : i32
    return %c0_i32, %c0_i32_0 : i32, i32
  }
  func.func @transform_8(%arg0: i32) -> (i32, i32) {
    %c0_i32 = arith.constant 0 : i32
    %c0_i32_0 = arith.constant 0 : i32
    %c0_i32_1 = arith.constant 0 : i32
    return %c0_i32, %c0_i32_0 : i32, i32
  }
  func.func @transform_9(%arg0: i32) -> (i32, i32) {
    %c0_i32 = arith.constant 0 : i32
    %c0_i32_0 = arith.constant 0 : i32
    %c0_i32_1 = arith.constant 0 : i32
    return %c0_i32, %c0_i32_0 : i32, i32
  }
  func.func @transform_10(%arg0: i32) -> (i32, i32) {
    %c0_i32 = arith.constant 0 : i32
    %c0_i32_0 = arith.constant 0 : i32
    %c0_i32_1 = arith.constant 0 : i32
    return %c0_i32, %c0_i32_0 : i32, i32
  }
  func.func @transform_11(%arg0: i32) -> (i32, i32) {
    %c0_i32 = arith.constant 0 : i32
    %c0_i32_0 = arith.constant 0 : i32
    %c0_i32_1 = arith.constant 0 : i32
    return %c0_i32, %c0_i32_0 : i32, i32
  }
  func.func @transform_12(%arg0: i32) -> (i32, i32, i32) {
    %c0_i32 = arith.constant 0 : i32
    %c0_i32_0 = arith.constant 0 : i32
    %c0_i32_1 = arith.constant 0 : i32
    return %arg0, %c0_i32, %c0_i32_0 : i32, i32, i32
  }
  func.func @transform_13(%arg0: i32) -> (i32, i32, i32) {
    %c0_i32 = arith.constant 0 : i32
    %c0_i32_0 = arith.constant 0 : i32
    %c0_i32_1 = arith.constant 0 : i32
    return %arg0, %c0_i32, %c0_i32_0 : i32, i32, i32
  }
  func.func @transform_14(%arg0: i32) -> (i32, i32, i32) {
    %c0_i32 = arith.constant 0 : i32
    %c0_i32_0 = arith.constant 0 : i32
    %c0_i32_1 = arith.constant 0 : i32
    return %arg0, %c0_i32, %c0_i32_0 : i32, i32, i32
  }
}

</mosaic_0001>

<bundles_post_ra>
// kernel: tile.33
= control target key start
LH: loop header
LB: loop body
LE: loop exit
PB: predicated region body
PF: predicated region fallthrough
CT: control target
= control target key end

     0   :  { %s28_s0 = inlined_call_operand.vmem [shape: f32[8], index: 0, kind: input, shape index: {}]   ;;  %s29_s1 = inlined_call_operand.vmem [shape: f32[16,8], index: 1, kind: output, shape index: {}]  }
   0x1   :  { %v4_v0 = vld [vmem:[%s28_s0] ss:$0 sm:$0xff] }
   0x2   :  { %5 = vst [vmem:[%s29_s1] sm:$0xff] %v4_v0  ;;  %8 = vst [vmem:[%s29_s1 + $0x8] sm:$0xff] %v4_v0 }

// kernel: tile.34
= control target key start
LH: loop header
LB: loop body
LE: loop exit
PB: predicated region body
PF: predicated region fallthrough
CT: control target
= control target key end

     0   :  { %s131_s10 = smov 120   ;;  %s132_s11 = smov 104   ;;  %vm3_vm0 = vcmask 64512   ;;  %vm9_vm1 = vcmask 1048512   ;;  %vm15_vm2 = vcmask 982912   ;;  %vm21_vm3 = vcmask 917312   ;;  %s207_s0 = inlined_call_operand.vmem [shape: f32[16,8], index: 0, kind: input, shape index: {}]   ;;  %s208_s1 = inlined_call_operand.vmem [shape: f32[1,128], index: 1, kind: output, shape index: {}]  }
   0x1   :  { %v101_v0 = vld [vmem:[%s207_s0 + $0xf] sm:$0x1]   ;;  %v103_v1 = vld [vmem:[%s207_s0 + $0xd] sm:$0x1]   ;;  %v102_v2 = vld [vmem:[%s207_s0 + $0xe] sm:$0x1]  }
   0x2   :  { %7 = vrot.lane.b32.xlu0 %v101_v0, %s131_s10  ;;  %19 = vrot.lane.b32.xlu1 %v103_v1, %s132_s11  ;;  %v104_v3 = vld [vmem:[%s207_s0 + $0xc] sm:$0x1]   ;;  %s133_s16 = smov 112   ;;  %s134_s17 = smov 96   ;;  %v105_v4 = vld [vmem:[%s207_s0 + $0xb] sm:$0x1]  }
   0x3   :  { %v106_v5 = vld [vmem:[%s207_s0 + $0xa] sm:$0x1]   ;;  %v2_v6 = vld [vmem:[%s207_s0] sm:$0x1]   ;;  %s135_s24 = smov 88   ;;  %s136_s25 = smov 80  }
   0x4   :  { %4 = vst.msk [vmem:[#allocation0] sm:$0x1] %vm3_vm0, %v2_v6   ;;  %v107_v7 = vld [vmem:[%s207_s0 + $0x9] sm:$0x1]   ;;  %v108_v8 = vld [vmem:[%s207_s0 + $0x8] sm:$0x1]  }
   0x5   :  { %s137_s30 = smov 72   ;;  %s138_s2 = smov 64   ;;  %v109_v9 = vld [vmem:[%s207_s0 + $0x7] sm:$0x1]   ;;  %v110_v10 = vld [vmem:[%s207_s0 + $0x6] sm:$0x1]  }
   0x6   :  { %13 = vrot.lane.b32.xlu0 %v102_v2, %s133_s16  ;;  %25 = vrot.lane.b32.xlu1 %v104_v3, %s134_s17  ;;  %s139_s7 = smov 56   ;;  %s140_s8 = smov 48   ;;  %v111_v11 = vld [vmem:[%s207_s0 + $0x5] sm:$0x1]   ;;  %v112_v12 = vld [vmem:[%s207_s0 + $0x4] sm:$0x1]  }
   0x7   :  { %s141_s13 = smov 40   ;;  %s142_s14 = smov 32   ;;  %v113_v13 = vld [vmem:[%s207_s0 + $0x3] sm:$0x1]   ;;  %v114_v14 = vld [vmem:[%s207_s0 + $0x2] sm:$0x1]  }
   0x8   :  { %s143_s19 = smov 24   ;;  %s144_s20 = smov 16   ;;  %v115_v15 = vld [vmem:[%s207_s0 + $0x1] sm:$0x1]   ;;  %vm27_vm4 = vcmask 851712   ;;  %vm33_vm5 = vcmask 786112  }
   0x9   :  { %s145_s0 = smov 8   ;;  %vm39_vm6 = vcmask 720512   ;;  %vm45_vm7 = vcmask 654912   ;;  %vm51_vm8 = vcmask 589312   ;;  %vm57_vm9 = vcmask 523712  }
   0xa   :  { %31 = vrot.lane.b32.xlu0 %v105_v4, %s135_s24  ;;  %37 = vrot.lane.b32.xlu1 %v106_v5, %s136_s25  ;;  %vm63_vm10 = vcmask 458112   ;;  %vm69_vm11 = vcmask 392512   ;;  %vm75_vm12 = vcmask 326912   ;;  %vm81_vm13 = vcmask 261312  }
   0xb   :  { %vm87_vm14 = vcmask 195712   ;;  %vm93_vm15 = vcmask 130112  }
   0xe   :  { %43 = vrot.lane.b32.xlu0 %v107_v7, %s137_s30  ;;  %49 = vrot.lane.b32.xlu1 %v108_v8, %s138_s2 }
  0x12   :  { %55 = vrot.lane.b32.xlu0 %v109_v9, %s139_s7  ;;  %61 = vrot.lane.b32.xlu1 %v110_v10, %s140_s8 }
  0x16   :  { %67 = vrot.lane.b32.xlu0 %v111_v11, %s141_s13  ;;  %73 = vrot.lane.b32.xlu1 %v112_v12, %s142_s14 }
  0x1a   :  { %79 = vrot.lane.b32.xlu0 %v113_v13, %s143_s19  ;;  %85 = vrot.lane.b32.xlu1 %v114_v14, %s144_s20 }
  0x1e   :  { %91 = vrot.lane.b32.xlu0 %v115_v15, %s145_s0 }
  0x74   :  { %v8_v16 = vpop.permute.xlu0 %7   ;;  %v20_v17 = vpop.permute.xlu1 %19  }
  0x75   :  { %10 = vst.msk [vmem:[#allocation0] sm:$0x1] %vm9_vm1, %v8_v16  }
  0x78   :  { %v14_v18 = vpop.permute.xlu0 %13   ;;  %v26_v19 = vpop.permute.xlu1 %25  }
  0x79   :  { %16 = vst.msk [vmem:[#allocation0] sm:$0x1] %vm15_vm2, %v14_v18  }
  0x7a   :  { %22 = vst.msk [vmem:[#allocation0] sm:$0x1] %vm21_vm3, %v20_v17  }
  0x7b   :  { %28 = vst.msk [vmem:[#allocation0] sm:$0x1] %vm27_vm4, %v26_v19  }
  0x7c   :  { %v32_v20 = vpop.permute.xlu0 %31   ;;  %v38_v21 = vpop.permute.xlu1 %37  }
  0x7d   :  { %34 = vst.msk [vmem:[#allocation0] sm:$0x1] %vm33_vm5, %v32_v20  }
  0x7e   :  { %40 = vst.msk [vmem:[#allocation0] sm:$0x1] %vm39_vm6, %v38_v21  }
  0x80   :  { %v44_v22 = vpop.permute.xlu0 %43   ;;  %v50_v23 = vpop.permute.xlu1 %49  }
  0x81   :  { %46 = vst.msk [vmem:[#allocation0] sm:$0x1] %vm45_vm7, %v44_v22  }
  0x82   :  { %52 = vst.msk [vmem:[#allocation0] sm:$0x1] %vm51_vm8, %v50_v23  }
  0x84   :  { %v56_v24 = vpop.permute.xlu0 %55   ;;  %v62_v25 = vpop.permute.xlu1 %61  }
  0x85   :  { %58 = vst.msk [vmem:[#allocation0] sm:$0x1] %vm57_vm9, %v56_v24  }
  0x86   :  { %64 = vst.msk [vmem:[#allocation0] sm:$0x1] %vm63_vm10, %v62_v25  }
  0x88   :  { %v68_v26 = vpop.permute.xlu0 %67   ;;  %v74_v27 = vpop.permute.xlu1 %73  }
  0x89   :  { %70 = vst.msk [vmem:[#allocation0] sm:$0x1] %vm69_vm11, %v68_v26  }
  0x8a   :  { %76 = vst.msk [vmem:[#allocation0] sm:$0x1] %vm75_vm12, %v74_v27  }
  0x8c   :  { %v80_v28 = vpop.permute.xlu0 %79   ;;  %v86_v29 = vpop.permute.xlu1 %85  }
  0x8d   :  { %82 = vst.msk [vmem:[#allocation0] sm:$0x1] %vm81_vm13, %v80_v28  }
  0x8e   :  { %88 = vst.msk [vmem:[#allocation0] sm:$0x1] %vm87_vm14, %v86_v29  }
  0x90   :  { %v92_v30 = vpop.permute.xlu0 %91  }
  0x91   :  { %94 = vst.msk [vmem:[#allocation0] sm:$0x1] %vm93_vm15, %v92_v30  }
  0x98   :  { %v98_v31 = vld [vmem:[#allocation0] sm:$0x1] }
  0x99   :  { %100 = vst [vmem:[%s208_s1] sm:$0x1] %v98_v31 }

// kernel: basic_block_forward.1
= control target key start
LH: loop header
LB: loop body
LE: loop exit
PB: predicated region body
PF: predicated region fallthrough
CT: control target
= control target key end

     0   :  { %s3772_s29 = smov 0   ;;  %s4551_s0 = inlined_call_operand.vmem [shape: f32[2,16,128], index: 0, kind: input, shape index: {}]   ;;  %s4552_s1 = inlined_call_operand.vmem [shape: f32[2,16,128], index: 1, kind: input, shape index: {}]   ;;  %s4553_s2 = inlined_call_operand.vmem [shape: f32[2,16,128], index: 2, kind: input, shape index: {}]   ;;  %s4554_s3 = inlined_call_operand.vmem [shape: f32[3,128,128], index: 3, kind: input, shape index: {}]   ;;  %s4555_s4 = inlined_call_operand.vmem [shape: f32[3,128,128], index: 4, kind: input, shape index: {}]   ;;  %s4556_s5 = inlined_call_operand.vmem [shape: f32[3,128,128], index: 5, kind: input, shape index: {}]   ;;  %s4557_s6 = inlined_call_operand.vmem [shape: f32[1,128], index: 6, kind: input, shape index: {}]   ;;  %s4558_s7 = inlined_call_operand.vmem [shape: f32[1,128], index: 7, kind: input, shape index: {}]   ;;  %s4559_s8 = inlined_call_operand.vmem [shape: f32[1,128], index: 8, kind: input, shape index: {}]   ;;  %s4560_s9 = inlined_call_operand.vmem [shape: f32[1,128], index: 9, kind: input, shape index: {}]   ;;  %s4561_s10 = inlined_call_operand.vmem [shape: f32[1,128], index: 10, kind: input, shape index: {}]   ;;  %s4562_s11 = inlined_call_operand.vmem [shape: f32[1,128], index: 11, kind: input, shape index: {}]   ;;  %s4563_s12 = inlined_call_operand.vmem [shape: f32[2,16,128], index: 12, kind: output, shape index: {0}]   ;;  %s4564_s13 = inlined_call_operand.vmem [shape: f32[2,16,128], index: 13, kind: output, shape index: {1}]   ;;  %s4565_s14 = inlined_call_operand.vmem [shape: f32[2,16,128], index: 14, kind: output, shape index: {2}]  }
   0x1 LB: > { %s2193_s30 = sadd.s32 4294967295, %s3694_s29   ;;  %p2197_p0 = scmp.ge.s32.totalorder %s3694_s29, 1  ;;  %s3694_s29 = sphi %s3772_s29, %s25_s29  }
   0x2   : > { %p437_p1 = scmp.lt.s32.totalorder %s3694_s29, 3 }
   0x4   : > { %p438_p2 = pnand %p2197_p0, %p437_p1 }
   0x5   : > { %v2210_v0 = vld [vmem:[%s4554_s3 + $0x80] sm:$0xff] (!%p438_p2)  ;;  %v2211_v1 = vld [vmem:[%s4554_s3 + $0x88] sm:$0xff] (!%p438_p2)  ;;  %p503_p3 = scmp.lt.s32.totalorder (!%p438_p2), %s2193_s30, 1  ;;  %v2212_v5 = vld [vmem:[%s4554_s3 + $0x90] sm:$0xff] (!%p438_p2)  ;;  %v3696_v7 = vmov (!%p438_p2), 0.0  }
   0x6   : > { %441 = sbr.rel (%p438_p2) target bundleno = 677 (0x2a5), region = 68  ;;  %v551_v2 = vld [vmem:[%s4554_s3] sm:$0xff] (!%p438_p2)  ;;  %v3789_v3 = vpack.c.bf16 (!%p438_p2), %v2211_v1, %v2210_v0  ;;  %v552_v4 = vld [vmem:[%s4554_s3 + $0x8] sm:$0xff] (!%p438_p2)  ;;  %v2213_v6 = vld [vmem:[%s4554_s3 + $0x98] sm:$0xff] (!%p438_p2)  ;;  %533 = vst [vmem:[#allocation2] sm:$0x1] (!%p438_p2), %v3696_v7 }
   0x7   : > { %534 = vst [vmem:[#allocation2 + $0x11] sm:$0x1] (!%p438_p2), %v3696_v7  ;;  %v3800_v8 = vpack.c.bf16 (!%p438_p2), %v552_v4, %v551_v2  ;;  %v3802_v9 = vpack.c.bf16 (!%p438_p2), %v2213_v6, %v2212_v5  ;;  %v553_v10 = vld [vmem:[%s4554_s3 + $0x10] sm:$0xff] (!%p438_p2)  ;;  %v554_v11 = vld [vmem:[%s4554_s3 + $0x18] sm:$0xff] (!%p438_p2)  ;;  %v2214_v12 = vld [vmem:[%s4554_s3 + $0xa0] sm:$0xff] (!%p438_p2) }
   0x8   : > { %3180 = vmatprep.subr.bf16.mxu1 (!%p438_p2), %v3789_v3  ;;  %v3814_v13 = vpack.c.bf16 (!%p438_p2), %v554_v11, %v553_v10  ;;  %v2215_v14 = vld [vmem:[%s4554_s3 + $0xa8] sm:$0xff] (!%p438_p2)  ;;  %v555_v15 = vld [vmem:[%s4554_s3 + $0x20] sm:$0xff] (!%p438_p2)  ;;  %v2216_v19 = vld [vmem:[%s4554_s3 + $0xb0] sm:$0xff] (!%p438_p2) }
   0x9   : > { %v556_v16 = vld [vmem:[%s4554_s3 + $0x28] sm:$0xff] (!%p438_p2)  ;;  %3212 = vmatprep.subr.bf16.mxu0 (!%p438_p2), %v3800_v8  ;;  %3182 = vmatpush3.bf16.msra.mxu1 (!%p438_p2), %v3789_v3  ;;  %v3831_v17 = vpack.c.bf16 (!%p438_p2), %v2215_v14, %v2214_v12  ;;  %v2217_v20 = vld [vmem:[%s4554_s3 + $0xb8] sm:$0xff] (!%p438_p2)  ;;  %v557_v21 = vld [vmem:[%s4554_s3 + $0x30] sm:$0xff] (!%p438_p2) }
   0xa   : > { %3214 = vmatpush3.bf16.msra.mxu0 (!%p438_p2), %v3800_v8  ;;  %3184 = vmatprep.subr.bf16.mxu1 (!%p438_p2), %v3802_v9  ;;  %v3834_v18 = vpack.c.bf16 (!%p438_p2), %v556_v16, %v555_v15  ;;  %v558_v22 = vld [vmem:[%s4554_s3 + $0x38] sm:$0xff] (!%p438_p2)  ;;  %v3855_v23 = vpack.c.bf16 (!%p438_p2), %v2217_v20, %v2216_v19  ;;  %v2218_v25 = vld [vmem:[%s4554_s3 + $0xc0] sm:$0xff] (!%p438_p2)  ;;  %v2219_v26 = vld [vmem:[%s4554_s3 + $0xc8] sm:$0xff] (!%p438_p2) }
   0xb   : > { %3216 = vmatprep.subr.bf16.mxu0 (!%p438_p2), %v3814_v13  ;;  %v3858_v24 = vpack.c.bf16 (!%p438_p2), %v558_v22, %v557_v21  ;;  %v559_v28 = vld [vmem:[%s4554_s3 + $0x40] sm:$0xff] (!%p438_p2)  ;;  %v560_v29 = vld [vmem:[%s4554_s3 + $0x48] sm:$0xff] (!%p438_p2)  ;;  %v3882_v31 = vpack.c.bf16 (!%p438_p2), %v2219_v26, %v2218_v25  ;;  %v2220_v33 = vld [vmem:[%s4554_s3 + $0xd0] sm:$0xff] (!%p438_p2) }
   0xc   : > { %v3885_v32 = vpack.c.bf16 (!%p438_p2), %v560_v29, %v559_v28  ;;  %v2221_v34 = vld [vmem:[%s4554_s3 + $0xd8] sm:$0xff] (!%p438_p2)  ;;  %v561_v35 = vld [vmem:[%s4554_s3 + $0x50] sm:$0xff] (!%p438_p2)  ;;  %v2222_v37 = vld [vmem:[%s4554_s3 + $0xe0] sm:$0xff] (!%p438_p2) }
   0xd   : > { %s4567_s30 = smov (!%p503_p3, %s2193_s30), 1  ;;  %3186 = vmatpush3.bf16.msra.mxu1 %v3802_v9  ;;  %v562_v36 = vld [vmem:[%s4554_s3 + $0x58] sm:$0xff]  ;;  %v3909_v38 = vpack.c.bf16 %v2221_v34, %v2220_v33  ;;  %v2223_v39 = vld [vmem:[%s4554_s3 + $0xe8] sm:$0xff]  ;;  %v563_v40 = vld [vmem:[%s4554_s3 + $0x60] sm:$0xff] }
   0xe   : > { %s3827_s25 = sshll.u32 %s4567_s30, 4  ;;  %3218 = vmatpush3.bf16.msra.mxu0 %v3814_v13  ;;  %3188 = vmatprep.subr.bf16.mxu1 %v3831_v17  ;;  %v564_v41 = vld [vmem:[%s4554_s3 + $0x68] sm:$0xff]  ;;  %v3921_v42 = vpack.c.bf16 %v562_v36, %v561_v35  ;;  %v3934_v49 = vpack.c.bf16 %v2223_v39, %v2222_v37  ;;  %v2224_v51 = vld [vmem:[%s4554_s3 + $0xf0] sm:$0xff]  ;;  %v2225_v52 = vld [vmem:[%s4554_s3 + $0xf8] sm:$0xff] }
   0xf   : > { %s507_s21 = scalar_lea.vmem %s4551_s0, %s3827_s25  ;;  %3220 = vmatprep.subr.bf16.mxu0 %v3834_v18  ;;  %s512_s27 = scalar_lea.vmem %s4552_s1, %s3827_s25  ;;  %v3937_v50 = vpack.c.bf16 %v564_v41, %v563_v40  ;;  %v565_v53 = vld [vmem:[%s4554_s3 + $0x70] sm:$0xff]  ;;  %v566_v54 = vld [vmem:[%s4554_s3 + $0x78] sm:$0xff]  ;;  %v3954_v55 = vpack.c.bf16 %v2225_v52, %v2224_v51  ;;  %v2226_v57 = vld [vmem:[%s4554_s3 + $0x100] sm:$0xff] }
  0x10   : > { %v3866_v27 = vld [vmem:[%s507_s21] sm:$0xff]  ;;  %v3874_v30 = vld [vmem:[%s507_s21 + $0x8] sm:$0xff]  ;;  %v3957_v56 = vpack.c.bf16 %v566_v54, %v565_v53  ;;  %v2228_v60 = vld [vmem:[%s4554_s3 + $0x110] sm:$0xff]  ;;  %s522_s26 = scalar_lea.vmem %s4563_s12, %s3827_s25  ;;  %s527_s15 = scalar_lea.vmem %s4564_s13, %s3827_s25 }
  0x11   : > { %547 = vst [vmem:[#allocation2 + $0x1] sm:$0xff] %v3866_v27  ;;  %2686 = vmatprep.mubr.f32.mxu1 %v3866_v27  ;;  %3190 = vmatpush3.bf16.msra.mxu1 %v3831_v17  ;;  %548 = vst [vmem:[#allocation2 + $0x9] sm:$0xff] %v3874_v30  ;;  %v3923_v43 = vld [vmem:[%s512_s27] sm:$0xff]  ;;  %v3925_v45 = vld [vmem:[%s512_s27 + $0x8] sm:$0xff]  ;;  %s517_s19 = scalar_lea.vmem %s4553_s2, %s3827_s25  ;;  %s532_s24 = scalar_lea.vmem %s4565_s14, %s3827_s25 }
  0x12   : > { %3222 = vmatpush3.bf16.msra.mxu0 %v3834_v18  ;;  %3192 = vmatprep.subr.bf16.mxu1 %v3855_v23  ;;  %v2227_v58 = vld [vmem:[%s4554_s3 + $0x108] sm:$0xff]  ;;  %v2229_v61 = vld [vmem:[%s4554_s3 + $0x118] sm:$0xff]  ;;  %v2230_v63 = vld [vmem:[%s4554_s3 + $0x120] sm:$0xff] }
  0x13   : > { %3224 = vmatprep.subr.bf16.mxu0 %v3858_v24  ;;  %v3969_v59 = vpack.c.bf16 %v2227_v58, %v2226_v57  ;;  %v3981_v62 = vpack.c.bf16 %v2229_v61, %v2228_v60  ;;  %v2231_v0 = vld [vmem:[%s4554_s3 + $0x128] sm:$0xff]  ;;  %v2232_v2 = vld [vmem:[%s4554_s3 + $0x130] sm:$0xff]  ;;  %v2233_v4 = vld [vmem:[%s4554_s3 + $0x138] sm:$0xff] }
  0x14   : > { %v3994_v1 = vpack.c.bf16 %v2231_v0, %v2230_v63  ;;  %v2234_v5 = vld [vmem:[%s4554_s3 + $0x140] sm:$0xff]  ;;  %v2235_v6 = vld [vmem:[%s4554_s3 + $0x148] sm:$0xff]  ;;  %v2237_v10 = vld [vmem:[%s4554_s3 + $0x158] sm:$0xff] }
  0x15   : > { %3194 = vmatpush3.bf16.msra.mxu1 %v3855_v23  ;;  %v4019_v7 = vpack.c.bf16 %v2235_v6, %v2234_v5  ;;  %v2238_v12 = vld [vmem:[%s4554_s3 + $0x160] sm:$0xff]  ;;  %v2239_v14 = vld [vmem:[%s4554_s3 + $0x168] sm:$0xff]  ;;  %v2240_v16 = vld [vmem:[%s4554_s3 + $0x170] sm:$0xff] }
  0x16   : > { %3226 = vmatpush3.bf16.msra.mxu0 %v3858_v24  ;;  %3196 = vmatprep.subr.bf16.mxu1 %v3882_v31  ;;  %v4043_v15 = vpack.c.bf16 %v2239_v14, %v2238_v12  ;;  %v2276_v20 = vld [vmem:[%s4555_s4 + $0x80] sm:$0xff]  ;;  %v2277_v21 = vld [vmem:[%s4555_s4 + $0x88] sm:$0xff]  ;;  %v2279_v25 = vld [vmem:[%s4555_s4 + $0x98] sm:$0xff] }
  0x17   : > { %3228 = vmatprep.subr.bf16.mxu0 %v3885_v32  ;;  %v3371_v22 = vpack.c.bf16 %v2277_v21, %v2276_v20  ;;  %v2284_v35 = vld [vmem:[%s4555_s4 + $0xc0] sm:$0xff]  ;;  %v2285_v36 = vld [vmem:[%s4555_s4 + $0xc8] sm:$0xff]  ;;  %v2287_v39 = vld [vmem:[%s4555_s4 + $0xd8] sm:$0xff] }
  0x18   : > { %v549_v44 = vld [vmem:[#allocation2] sm:$0xff]  ;;  %v550_v46 = vld [vmem:[#allocation2 + $0x8] sm:$0xff]  ;;  %v3387_v37 = vpack.c.bf16 %v2285_v36, %v2284_v35  ;;  %v1145_v0 = vld [vmem:[%s4555_s4 + $0x10] sm:$0xff] }
  0x19   : > { %2721 = vmatprep.mubr.f32.mxu0 %v549_v44  ;;  %v736_v47 = vld [vmem:[#allocation2 + $0x2] sm:$0xff]  ;;  %v3927_v48 = vld [vmem:[#allocation2 + $0xa] sm:$0xff]  ;;  %3198 = vmatpush3.bf16.msra.mxu1 %v3882_v31  ;;  %v4158_v54 = vld [vmem:[%s4557_s6] ss:$0 sm:$0xff] }
  0x1a   : > { %850 = vst [vmem:[#allocation2 + $0x1] sm:$0xff] %v3923_v43  ;;  %851 = vst [vmem:[#allocation2 + $0x9] sm:$0xff] %v3925_v45  ;;  %3230 = vmatpush3.bf16.msra.mxu0 %v3885_v32  ;;  %3200 = vmatprep.subr.bf16.mxu1 %v3909_v38  ;;  %v2288_v41 = vld [vmem:[%s4555_s4 + $0xe0] sm:$0xff]  ;;  %v1148_v6 = vld [vmem:[%s4555_s4 + $0x28] sm:$0xff] }
  0x1b   : > { %3232 = vmatprep.subr.bf16.mxu0 %v3921_v42  ;;  %v4163_v58 = vld [vmem:[%s4558_s7] ss:$0 sm:$0xff] }
  0x1c   : > { %v1147_v5 = vld [vmem:[%s4555_s4 + $0x20] sm:$0xff] }
  0x1d   : > { %3202 = vmatpush3.bf16.msra.mxu1 %v3909_v38  ;;  %v1151_v14 = vld [vmem:[%s4555_s4 + $0x40] sm:$0xff] }
  0x1e   : > { %3234 = vmatpush3.bf16.msra.mxu0 %v3921_v42  ;;  %3204 = vmatprep.subr.bf16.mxu1 %v3934_v49  ;;  %v1155_v21 = vld [vmem:[%s4555_s4 + $0x60] sm:$0xff] }
  0x1f   : > { %3236 = vmatprep.subr.bf16.mxu0 %v3937_v50 }
  0x21   : > { %3206 = vmatpush3.bf16.msra.mxu1 %v3934_v49  ;;  %v852_v26 = vld [vmem:[#allocation2] sm:$0xff]  ;;  %v1039_v34 = vld [vmem:[#allocation2 + $0xa] sm:$0xff] }
  0x22   : > { %3238 = vmatpush3.bf16.msra.mxu0 %v3937_v50  ;;  %3208 = vmatprep.subr.bf16.mxu1 %v3954_v55 }
  0x23   : > { %3240 = vmatprep.subr.bf16.mxu0 %v3957_v56 }
  0x25   : > { %3210 = vmatpush3.bf16.msra.mxu1 %v3954_v55 }
  0x26   : > { %3242 = vmatpush3.bf16.msra.mxu0 %v3957_v56  ;;  %3276 = vmatprep.subr.bf16.mxu1 %v3789_v3 }
  0x27   : > { %3244 = vmatprep.subr.bf16.mxu0 %v3969_v59 }
  0x28   : > { %2687 = vmatmul.mubr.f32.vlgmr.msra.gmra.mrb[0].mxu1 %v3874_v30 }
  0x29   : > { %2722 = vmatmul.mubr.f32.vlgmr.msra.gmra.mrb[0].mxu0 %v550_v46  ;;  %3278 = vmatpush3.bf16.msra.mxu1 %v3789_v3  ;;  %v4007_v3 = vpack.c.bf16 %v2233_v4, %v2232_v2  ;;  %v2290_v46 = vld [vmem:[%s4555_s4 + $0xf0] sm:$0xff] }
  0x2a   : > { %3246 = vmatpush3.bf16.msra.mxu0 %v3969_v59  ;;  %3280 = vmatprep.subr.bf16.mxu1 %v3802_v9 }
  0x2b   : > { %3248 = vmatprep.subr.bf16.mxu0 %v3981_v62  ;;  %2756 = vmatprep.mubr.f32.mxu0 %v736_v47  ;;  %v2291_v47 = vld [vmem:[%s4555_s4 + $0xf8] sm:$0xff] }
  0x2c   : > { %2791 = vmatprep.mubr.f32.mxu1 %v3923_v43 }
  0x2d   : > { %3282 = vmatpush3.bf16.msra.mxu1 %v3802_v9  ;;  %v2236_v9 = vld [vmem:[%s4554_s3 + $0x150] sm:$0xff] }
  0x2e   : > { %3250 = vmatpush3.bf16.msra.mxu0 %v3981_v62  ;;  %3284 = vmatprep.subr.bf16.mxu1 %v3831_v17  ;;  %v4031_v11 = vpack.c.bf16 %v2237_v10, %v2236_v9  ;;  %v1149_v9 = vld [vmem:[%s4555_s4 + $0x30] sm:$0xff]  ;;  %v1150_v10 = vld [vmem:[%s4555_s4 + $0x38] sm:$0xff] }
  0x2f   : > { %3252 = vmatprep.subr.bf16.mxu0 %v3994_v1  ;;  %v4203_v12 = vpack.c.bf16 %v1150_v10, %v1149_v9  ;;  %v2344_v10 = vld [vmem:[%s4556_s5 + $0x90] sm:$0xff] }
  0x31   : > { %3286 = vmatpush3.bf16.msra.mxu1 %v3831_v17  ;;  %v2241_v17 = vld [vmem:[%s4554_s3 + $0x178] sm:$0xff] }
  0x32   : > { %3254 = vmatpush3.bf16.msra.mxu0 %v3994_v1  ;;  %3288 = vmatprep.subr.bf16.mxu1 %v3855_v23  ;;  %v4055_v19 = vpack.c.bf16 %v2241_v17, %v2240_v16  ;;  %v1153_v17 = vld [vmem:[%s4555_s4 + $0x50] sm:$0xff] }
  0x33   : > { %3256 = vmatprep.subr.bf16.mxu0 %v4007_v3 }
  0x35   : > { %3290 = vmatpush3.bf16.msra.mxu1 %v3855_v23  ;;  %v2278_v23 = vld [vmem:[%s4555_s4 + $0x90] sm:$0xff] }
  0x36   : > { %3258 = vmatpush3.bf16.msra.mxu0 %v4007_v3  ;;  %3292 = vmatprep.subr.bf16.mxu1 %v3882_v31  ;;  %v3375_v28 = vpack.c.bf16 %v2279_v25, %v2278_v23  ;;  %v1157_v25 = vld [vmem:[%s4555_s4 + $0x70] sm:$0xff] }
  0x37   : > { %3260 = vmatprep.subr.bf16.mxu0 %v4019_v7 }
  0x39   : > { %3294 = vmatpush3.bf16.msra.mxu1 %v3882_v31  ;;  %v2282_v31 = vld [vmem:[%s4555_s4 + $0xb0] sm:$0xff] }
  0x3a   : > { %3262 = vmatpush3.bf16.msra.mxu0 %v4019_v7  ;;  %3296 = vmatprep.subr.bf16.mxu1 %v3909_v38 }
  0x3b   : > { %3264 = vmatprep.subr.bf16.mxu0 %v4031_v11 }
  0x3d   : > { %3298 = vmatpush3.bf16.msra.mxu1 %v3909_v38  ;;  %v2286_v38 = vld [vmem:[%s4555_s4 + $0xd0] sm:$0xff] }
  0x3e   : > { %3266 = vmatpush3.bf16.msra.mxu0 %v4031_v11  ;;  %3300 = vmatprep.subr.bf16.mxu1 %v3934_v49  ;;  %v3391_v40 = vpack.c.bf16 %v2287_v39, %v2286_v38  ;;  %v2299_v38 = vld [vmem:[%s4555_s4 + $0x138] sm:$0xff] }
  0x3f   : > { %3268 = vmatprep.subr.bf16.mxu0 %v4043_v15 }
  0x41   : > { %3302 = vmatpush3.bf16.msra.mxu1 %v3934_v49  ;;  %v1143_v49 = vld [vmem:[%s4555_s4] sm:$0xff] }
  0x42   : > { %3270 = vmatpush3.bf16.msra.mxu0 %v4043_v15  ;;  %3304 = vmatprep.subr.bf16.mxu1 %v3954_v55 }
  0x43   : > { %3272 = vmatprep.subr.bf16.mxu0 %v4055_v19 }
  0x45   : > { %3306 = vmatpush3.bf16.msra.mxu1 %v3954_v55 }
  0x46   : > { %3274 = vmatpush3.bf16.msra.mxu0 %v4055_v19  ;;  %3308 = vmatprep.subr.bf16.mxu1 %v3800_v8 }
  0x47   : > { %3372 = vmatprep.subr.bf16.mxu0 %v3371_v22 }
  0x48   : > { %2792 = vmatmul.mubr.f32.vlgmr.msra.gmra.mrb[2].mxu1 %v3925_v45 }
  0x49   : > { %2757 = vmatmul.mubr.f32.vlgmr.msra.gmra.mrb[0].mxu0 %v3927_v48  ;;  %3310 = vmatpush3.bf16.msra.mxu1 %v3800_v8  ;;  %v853_v8 = vld [vmem:[#allocation2 + $0x8] sm:$0xff]  ;;  %v3399_v48 = vpack.c.bf16 %v2291_v47, %v2290_v46  ;;  %v2303_v46 = vld [vmem:[%s4555_s4 + $0x158] sm:$0xff] }
  0x4a   : > { %3312 = vmatprep.subr.bf16.mxu1 %v3814_v13  ;;  %2826 = vmatprep.mubr.f32.mxu1 %v852_v26  ;;  %v1158_v26 = vld [vmem:[%s4555_s4 + $0x78] sm:$0xff] }
  0x4b   : > { %3374 = vmatpush3.bf16.msra.mxu0 %v3371_v22 }
  0x4c   : > { %3376 = vmatprep.subr.bf16.mxu0 %v3375_v28 }
  0x4d   : > { %3314 = vmatpush3.bf16.msra.mxu1 %v3814_v13  ;;  %v1038_v13 = vld [vmem:[#allocation2 + $0x2] sm:$0xff] }
  0x4e   : > { %3316 = vmatprep.subr.bf16.mxu1 %v3834_v18 }
  0x4f   : > { %3378 = vmatpush3.bf16.msra.mxu0 %v3375_v28 }
  0x51   : > { %3318 = vmatpush3.bf16.msra.mxu1 %v3834_v18  ;;  %v2280_v18 = vld [vmem:[%s4555_s4 + $0xa0] sm:$0xff] }
  0x52   : > { %3320 = vmatprep.subr.bf16.mxu1 %v3858_v24 }
  0x55   : > { %3322 = vmatpush3.bf16.msra.mxu1 %v3858_v24  ;;  %v2281_v24 = vld [vmem:[%s4555_s4 + $0xa8] sm:$0xff] }
  0x56   : > { %3324 = vmatprep.subr.bf16.mxu1 %v3885_v32  ;;  %v3379_v29 = vpack.c.bf16 %v2281_v24, %v2280_v18  ;;  %v2294_v24 = vld [vmem:[%s4555_s4 + $0x110] sm:$0xff] }
  0x58   : > { %3380 = vmatprep.subr.bf16.mxu0 %v3379_v29 }
  0x59   : > { %3326 = vmatpush3.bf16.msra.mxu1 %v3885_v32  ;;  %v2283_v32 = vld [vmem:[%s4555_s4 + $0xb8] sm:$0xff]  ;;  %3382 = vmatpush3.bf16.msra.mxu0 %v3379_v29 }
  0x5a   : > { %3328 = vmatprep.subr.bf16.mxu1 %v3921_v42  ;;  %v3383_v33 = vpack.c.bf16 %v2283_v32, %v2282_v31 }
  0x5c   : > { %3384 = vmatprep.subr.bf16.mxu0 %v3383_v33 }
  0x5d   : > { %3330 = vmatpush3.bf16.msra.mxu1 %v3921_v42  ;;  %3386 = vmatpush3.bf16.msra.mxu0 %v3383_v33  ;;  %v2289_v42 = vld [vmem:[%s4555_s4 + $0xe8] sm:$0xff] }
  0x5e   : > { %3332 = vmatprep.subr.bf16.mxu1 %v3937_v50  ;;  %3388 = vmatprep.subr.bf16.mxu0 %v3387_v37  ;;  %v3395_v44 = vpack.c.bf16 %v2289_v42, %v2288_v41  ;;  %v2301_v41 = vld [vmem:[%s4555_s4 + $0x148] sm:$0xff] }
  0x61   : > { %3334 = vmatpush3.bf16.msra.mxu1 %v3937_v50  ;;  %3390 = vmatpush3.bf16.msra.mxu0 %v3387_v37  ;;  %v1144_v50 = vld [vmem:[%s4555_s4 + $0x8] sm:$0xff] }
  0x62   : > { %3336 = vmatprep.subr.bf16.mxu1 %v3957_v56  ;;  %3392 = vmatprep.subr.bf16.mxu0 %v3391_v40  ;;  %v4151_v51 = vpack.c.bf16 %v1144_v50, %v1143_v49  ;;  %v2305_v49 = vld [vmem:[%s4555_s4 + $0x168] sm:$0xff] }
  0x65   : > { %3338 = vmatpush3.bf16.msra.mxu1 %v3957_v56  ;;  %3394 = vmatpush3.bf16.msra.mxu0 %v3391_v40 }
  0x66   : > { %3340 = vmatprep.subr.bf16.mxu1 %v3969_v59  ;;  %3396 = vmatprep.subr.bf16.mxu0 %v3395_v44 }
  0x68   : > { %2827 = vmatmul.mubr.f32.vlgmr.msra.gmra.mrb[2].mxu1 %v853_v8  ;;  %v2292_v8 = vld [vmem:[%s4555_s4 + $0x100] sm:$0xff] }
  0x69   : > { %3342 = vmatpush3.bf16.msra.mxu1 %v3969_v59  ;;  %2861 = vmatprep.mubr.f32.mxu1 %v1038_v13  ;;  %v2293_v13 = vld [vmem:[%s4555_s4 + $0x108] sm:$0xff] }
  0x6a   : > { %3344 = vmatprep.subr.bf16.mxu1 %v3981_v62  ;;  %3398 = vmatpush3.bf16.msra.mxu0 %v3395_v44  ;;  %v4253_v18 = vpack.c.bf16 %v2293_v13, %v2292_v8  ;;  %v2351_v8 = vld [vmem:[%s4556_s5 + $0xc8] sm:$0xff] }
  0x6b   : > { %3400 = vmatprep.subr.bf16.mxu0 %v3399_v48 }
  0x6d   : > { %3346 = vmatpush3.bf16.msra.mxu1 %v3981_v62 }
  0x6e   : > { %3348 = vmatprep.subr.bf16.mxu1 %v3994_v1  ;;  %3402 = vmatpush3.bf16.msra.mxu0 %v3399_v48 }
  0x6f   : > { %3404 = vmatprep.subr.bf16.mxu0 %v4151_v51 }
  0x71   : > { %3350 = vmatpush3.bf16.msra.mxu1 %v3994_v1  ;;  %v1146_v1 = vld [vmem:[%s4555_s4 + $0x18] sm:$0xff] }
  0x72   : > { %3352 = vmatprep.subr.bf16.mxu1 %v4007_v3 }
  0x75   : > { %3354 = vmatpush3.bf16.msra.mxu1 %v4007_v3  ;;  %v4180_v3 = vpack.c.bf16 %v1146_v1, %v1145_v0 }
  0x76   : > { %3356 = vmatprep.subr.bf16.mxu1 %v4019_v7 }
  0x79   : > { %3358 = vmatpush3.bf16.msra.mxu1 %v4019_v7  ;;  %v4193_v7 = vpack.c.bf16 %v1148_v6, %v1147_v5 }
  0x7a   : > { %3360 = vmatprep.subr.bf16.mxu1 %v4031_v11 }
  0x7d   : > { %3362 = vmatpush3.bf16.msra.mxu1 %v4031_v11 }
  0x7e   : > { %3364 = vmatprep.subr.bf16.mxu1 %v4043_v15 }
  0x81   : > { %3366 = vmatpush3.bf16.msra.mxu1 %v4043_v15  ;;  %v1152_v15 = vld [vmem:[%s4555_s4 + $0x48] sm:$0xff] }
  0x82   : > { %3368 = vmatprep.subr.bf16.mxu1 %v4055_v19  ;;  %v4213_v16 = vpack.c.bf16 %v1152_v15, %v1151_v14  ;;  %v2346_v14 = vld [vmem:[%s4556_s5 + $0xa0] sm:$0xff]  ;;  %v2347_v15 = vld [vmem:[%s4556_s5 + $0xa8] sm:$0xff] }
  0x85   : > { %3370 = vmatpush3.bf16.msra.mxu1 %v4055_v19  ;;  %v1154_v19 = vld [vmem:[%s4555_s4 + $0x58] sm:$0xff] }
  0x86   : > { %3468 = vmatprep.subr.bf16.mxu1 %v3371_v22  ;;  %v4223_v20 = vpack.c.bf16 %v1154_v19, %v1153_v17  ;;  %v2348_v17 = vld [vmem:[%s4556_s5 + $0xb0] sm:$0xff]  ;;  %v2349_v19 = vld [vmem:[%s4556_s5 + $0xb8] sm:$0xff] }
  0x88   : > { %2862 = vmatmul.mubr.f32.vlgmr.msra.gmra.mrb[2].mxu1 %v1039_v34  ;;  %v2297_v34 = vld [vmem:[%s4555_s4 + $0x128] sm:$0xff] }
  0x89   : > { %3470 = vmatpush3.bf16.msra.mxu1 %v3371_v22  ;;  %v1156_v22 = vld [vmem:[%s4555_s4 + $0x68] sm:$0xff] }
  0x8a   : > { %3472 = vmatprep.subr.bf16.mxu1 %v3375_v28  ;;  %v4233_v23 = vpack.c.bf16 %v1156_v22, %v1155_v21 }
  0x8d   : > { %3474 = vmatpush3.bf16.msra.mxu1 %v3375_v28  ;;  %v4243_v28 = vpack.c.bf16 %v1158_v26, %v1157_v25  ;;  %v2350_v26 = vld [vmem:[%s4556_s5 + $0xc0] sm:$0xff] }
  0x8e   : > { %3476 = vmatprep.subr.bf16.mxu1 %v3379_v29  ;;  %v3579_v13 = vpack.c.bf16 %v2351_v8, %v2350_v26  ;;  %v2372_v26 = vld [vmem:[%s4556_s5 + $0x170] sm:$0xff]  ;;  %v2373_v8 = vld [vmem:[%s4556_s5 + $0x178] sm:$0xff] }
  0x91   : > { %3478 = vmatpush3.bf16.msra.mxu1 %v3379_v29  ;;  %v2295_v29 = vld [vmem:[%s4555_s4 + $0x118] sm:$0xff] }
  0x92   : > { %3480 = vmatprep.subr.bf16.mxu1 %v3383_v33  ;;  %v4263_v31 = vpack.c.bf16 %v2295_v29, %v2294_v24  ;;  %v2353_v24 = vld [vmem:[%s4556_s5 + $0xd8] sm:$0xff] }
  0x95   : > { %3482 = vmatpush3.bf16.msra.mxu1 %v3383_v33  ;;  %v2296_v33 = vld [vmem:[%s4555_s4 + $0x120] sm:$0xff] }
  0x96   : > { %3484 = vmatprep.subr.bf16.mxu1 %v3387_v37  ;;  %v4273_v36 = vpack.c.bf16 %v2297_v34, %v2296_v33  ;;  %v2357_v34 = vld [vmem:[%s4556_s5 + $0xf8] sm:$0xff] }
  0x99   : > { %3486 = vmatpush3.bf16.msra.mxu1 %v3387_v37  ;;  %v2298_v37 = vld [vmem:[%s4555_s4 + $0x130] sm:$0xff] }
  0x9a   : > { %3488 = vmatprep.subr.bf16.mxu1 %v3391_v40  ;;  %v4283_v39 = vpack.c.bf16 %v2299_v38, %v2298_v37  ;;  %v1742_v37 = vld [vmem:[%s4556_s5 + $0x8] sm:$0xff] }
  0x9d   : > { %3490 = vmatpush3.bf16.msra.mxu1 %v3391_v40  ;;  %v2300_v40 = vld [vmem:[%s4555_s4 + $0x140] sm:$0xff] }
  0x9e   : > { %3492 = vmatprep.subr.bf16.mxu1 %v3395_v44  ;;  %v4293_v42 = vpack.c.bf16 %v2301_v41, %v2300_v40  ;;  %v1744_v40 = vld [vmem:[%s4556_s5 + $0x18] sm:$0xff] }
  0xa1   : > { %3494 = vmatpush3.bf16.msra.mxu1 %v3395_v44  ;;  %v2302_v44 = vld [vmem:[%s4555_s4 + $0x150] sm:$0xff] }
  0xa2   : > { %3496 = vmatprep.subr.bf16.mxu1 %v3399_v48  ;;  %v4303_v47 = vpack.c.bf16 %v2303_v46, %v2302_v44  ;;  %v1746_v44 = vld [vmem:[%s4556_s5 + $0x28] sm:$0xff] }
  0xa5   : > { %3498 = vmatpush3.bf16.msra.mxu1 %v3399_v48  ;;  %v2304_v48 = vld [vmem:[%s4555_s4 + $0x160] sm:$0xff] }
  0xa6   : > { %3500 = vmatprep.subr.bf16.mxu1 %v4151_v51  ;;  %v4313_v50 = vpack.c.bf16 %v2305_v49, %v2304_v48  ;;  %v1747_v48 = vld [vmem:[%s4556_s5 + $0x30] sm:$0xff]  ;;  %v1748_v49 = vld [vmem:[%s4556_s5 + $0x38] sm:$0xff] }
  0xfb   : > { %v2688_v52 = vpop.f32.mrb[0].mxu1 }
  0xfc   : > { %v652_v53 = vpop.f32.mrb[1].mxu1 }
 0x11c   : > { %v2758_v55 = vpop.f32.mrb[0].mxu0 }
 0x11d   : > { %v3659_v56 = vadd.f32 %v2758_v55, %v2688_v52  ;;  %v821_v57 = vpop.f32.mrb[1].mxu0  ;;  %v2306_v52 = vld [vmem:[%s4555_s4 + $0x170] sm:$0xff] }
 0x11e   : > { %v3660_v59 = vadd.f32 %v821_v57, %v652_v53  ;;  %v2307_v53 = vld [vmem:[%s4555_s4 + $0x178] sm:$0xff] }
 0x11f   : > { %v839_v60 = vmul.f32 %v3659_v56, %v4158_v54 }
 0x120   : > { %v838_v61 = vmul.f32 %v3660_v59, %v4158_v54 }
 0x121   : > { %v847_v62 = vadd.f32 %v4163_v58, %v839_v60  ;;  %v4325_v60 = vpack.c.bf16 %v2307_v53, %v2306_v52  ;;  %v3607_v52 = vpack.c.bf16 %v1748_v49, %v1747_v48  ;;  %v1750_v53 = vld [vmem:[%s4556_s5 + $0x48] sm:$0xff] }
 0x122   : > { %v846_v63 = vadd.f32 %v4163_v58, %v838_v61 }
 0x123   : > { %v4175_v2 = vmax.f32 %v847_v62, 0.0  ;;  %v2342_v62 = vld [vmem:[%s4556_s5 + $0x80] sm:$0xff] }
 0x124   : > { %v4177_v4 = vmax.f32 %v846_v63, 0.0  ;;  %v2343_v63 = vld [vmem:[%s4556_s5 + $0x88] sm:$0xff] }
 0x125   : > { %1140 = vst [vmem:[#allocation2 + $0x9] sm:$0xff] %v4175_v2  ;;  %v3563_v6 = vpack.c.bf16 %v2343_v63, %v2342_v62  ;;  %v1756_v62 = vld [vmem:[%s4556_s5 + $0x78] sm:$0xff] }
 0x126   : > { %1139 = vst [vmem:[#allocation2 + $0x1] sm:$0xff] %v4177_v4  ;;  %2896 = vmatprep.mubr.f32.mxu0 %v4177_v4 }
 0x127   : > { %2897 = vmatmul.mubr.f32.vlgmr.msra.gmra.mrb[2].mxu0 %v4175_v2 }
 0x128   : > { %3406 = vmatpush3.bf16.msra.mxu0 %v4151_v51 }
 0x129   : > { %3408 = vmatprep.subr.bf16.mxu0 %v4180_v3 }
 0x12c   : > { %3410 = vmatpush3.bf16.msra.mxu0 %v4180_v3 }
 0x12d   : > { %v1141_v11 = vld [vmem:[#allocation2] sm:$0xff]  ;;  %3412 = vmatprep.subr.bf16.mxu0 %v4193_v7  ;;  %v1142_v32 = vld [vmem:[#allocation2 + $0x8] sm:$0xff] }
 0x12e   : > { %2931 = vmatprep.mubr.f32.mxu0 %v1141_v11  ;;  %v1328_v35 = vld [vmem:[#allocation2 + $0x2] sm:$0xff] }
 0x130   : > { %3414 = vmatpush3.bf16.msra.mxu0 %v4193_v7 }
 0x131   : > { %3416 = vmatprep.subr.bf16.mxu0 %v4203_v12 }
 0x134   : > { %3418 = vmatpush3.bf16.msra.mxu0 %v4203_v12 }
 0x135   : > { %3420 = vmatprep.subr.bf16.mxu0 %v4213_v16 }
 0x138   : > { %3422 = vmatpush3.bf16.msra.mxu0 %v4213_v16 }
 0x139   : > { %3424 = vmatprep.subr.bf16.mxu0 %v4223_v20 }
 0x13c   : > { %3426 = vmatpush3.bf16.msra.mxu0 %v4223_v20 }
 0x13d   : > { %3428 = vmatprep.subr.bf16.mxu0 %v4233_v23 }
 0x140   : > { %3430 = vmatpush3.bf16.msra.mxu0 %v4233_v23 }
 0x141   : > { %3432 = vmatprep.subr.bf16.mxu0 %v4243_v28 }
 0x144   : > { %3434 = vmatpush3.bf16.msra.mxu0 %v4243_v28 }
 0x145   : > { %3436 = vmatprep.subr.bf16.mxu0 %v4253_v18 }
 0x147   : > { %2932 = vmatmul.mubr.f32.vlgmr.msra.gmra.mrb[2].mxu0 %v1142_v32  ;;  %v2355_v32 = vld [vmem:[%s4556_s5 + $0xe8] sm:$0xff] }
 0x148   : > { %3438 = vmatpush3.bf16.msra.mxu0 %v4253_v18  ;;  %2966 = vmatprep.mubr.f32.mxu0 %v1328_v35 }
 0x149   : > { %3440 = vmatprep.subr.bf16.mxu0 %v4263_v31 }
 0x14c   : > { %3442 = vmatpush3.bf16.msra.mxu0 %v4263_v31 }
 0x14d   : > { %3444 = vmatprep.subr.bf16.mxu0 %v4273_v36 }
 0x150   : > { %3446 = vmatpush3.bf16.msra.mxu0 %v4273_v36 }
 0x151   : > { %3448 = vmatprep.subr.bf16.mxu0 %v4283_v39 }
 0x154   : > { %3450 = vmatpush3.bf16.msra.mxu0 %v4283_v39 }
 0x155   : > { %3452 = vmatprep.subr.bf16.mxu0 %v4293_v42 }
 0x158   : > { %3454 = vmatpush3.bf16.msra.mxu0 %v4293_v42 }
 0x159   : > { %3456 = vmatprep.subr.bf16.mxu0 %v4303_v47 }
 0x15b   : > { %v2863_v55 = vpop.f32.mrb[2].mxu1 }
 0x15c   : > { %v1134_v56 = vmul.f32 %v2863_v55, %v4158_v54  ;;  %v1122_v57 = vpop.f32.mrb[3].mxu1  ;;  %3458 = vmatpush3.bf16.msra.mxu0 %v4303_v47 }
 0x15d   : > { %v1133_v59 = vmul.f32 %v4158_v54, %v1122_v57  ;;  %3460 = vmatprep.subr.bf16.mxu0 %v4313_v50  ;;  %v1329_v54 = vld [vmem:[#allocation2 + $0xa] sm:$0xff] }
 0x15e   : > { %v1136_v61 = vadd.f32 %v4163_v58, %v1134_v56  ;;  %v1752_v56 = vld [vmem:[%s4556_s5 + $0x58] sm:$0xff] }
 0x15f   : > { %v1135_v0 = vadd.f32 %v4163_v58, %v1133_v59  ;;  %v2345_v58 = vld [vmem:[%s4556_s5 + $0x98] sm:$0xff]  ;;  %v1754_v59 = vld [vmem:[%s4556_s5 + $0x68] sm:$0xff] }
 0x160   : > { %v1138_v1 = vmax.f32 %v1136_v61, 0.0  ;;  %3462 = vmatpush3.bf16.msra.mxu0 %v4313_v50 }
 0x161   : > { %v1137_v5 = vmax.f32 %v1135_v0, 0.0  ;;  %3464 = vmatprep.subr.bf16.mxu0 %v4325_v60  ;;  %v2359_v0 = vld [vmem:[%s4556_s5 + $0x108] sm:$0xff] }
 0x162   : > { %v4338_v9 = vsub.f32 %v1138_v1, %v4175_v2  ;;  %1445 = vst [vmem:[#allocation2 + $0x9] sm:$0xff] %v1138_v1  ;;  %v3567_v2 = vpack.c.bf16 %v2345_v58, %v2344_v10 }
 0x163   : > { %v1735_v11 = vsub.f32 %v1137_v5, %v4177_v4  ;;  %1444 = vst [vmem:[#allocation2 + $0x1] sm:$0xff] %v1137_v5  ;;  %3001 = vmatprep.mubr.f32.mxu1 %v1137_v5 }
 0x164   : > { %3466 = vmatpush3.bf16.msra.mxu0 %v4325_v60  ;;  %3002 = vmatmul.mubr.f32.vlgmr.msra.gmra.mrb[4].mxu1 %v1138_v1 }
 0x165   : > { %3502 = vmatpush3.bf16.msra.mxu1 %v4151_v51  ;;  %3564 = vmatprep.subr.bf16.mxu0 %v3563_v6  ;;  %v3571_v51 = vpack.c.bf16 %v2347_v15, %v2346_v14  ;;  %v2366_v15 = vld [vmem:[%s4556_s5 + $0x140] sm:$0xff] }
 0x166   : > { %3504 = vmatprep.subr.bf16.mxu1 %v4180_v3 }
 0x167   : > { %2967 = vmatmul.mubr.f32.vlgmr.msra.gmra.mrb[2].mxu0 %v1329_v54  ;;  %v2361_v54 = vld [vmem:[%s4556_s5 + $0x118] sm:$0xff] }
 0x168   : > { %3566 = vmatpush3.bf16.msra.mxu0 %v3563_v6  ;;  %3106 = vmatprep.mubr.f32.mxu0 %v1735_v11 }
 0x169   : > { %v4356_v4 = vld [vmem:[#allocation2 + $0xa] sm:$0xff]  ;;  %3506 = vmatpush3.bf16.msra.mxu1 %v4180_v3  ;;  %3568 = vmatprep.subr.bf16.mxu0 %v3567_v2  ;;  %v3575_v3 = vpack.c.bf16 %v2349_v19, %v2348_v17  ;;  %v2369_v19 = vld [vmem:[%s4556_s5 + $0x158] sm:$0xff] }
 0x16a   : > { %v1447_v21 = vld [vmem:[#allocation2 + $0x8] sm:$0xff]  ;;  %v1446_v25 = vld [vmem:[#allocation2] sm:$0xff]  ;;  %3508 = vmatprep.subr.bf16.mxu1 %v4193_v7  ;;  %v2368_v17 = vld [vmem:[%s4556_s5 + $0x150] sm:$0xff] }
 0x16b   : > { %v1632_v22 = vld [vmem:[#allocation2 + $0x2] sm:$0xff]  ;;  %3036 = vmatprep.mubr.f32.mxu1 %v1446_v25 }
 0x16c   : > { %1738 = vst [vmem:[#allocation2 + $0x9] sm:$0xff] %v4338_v9  ;;  %1737 = vst [vmem:[#allocation2 + $0x1] sm:$0xff] %v1735_v11  ;;  %3570 = vmatpush3.bf16.msra.mxu0 %v3567_v2  ;;  %v2364_v11 = vld [vmem:[%s4556_s5 + $0x130] sm:$0xff]  ;;  %v2365_v2 = vld [vmem:[%s4556_s5 + $0x138] sm:$0xff] }
 0x16d   : > { %3510 = vmatpush3.bf16.msra.mxu1 %v4193_v7  ;;  %3572 = vmatprep.subr.bf16.mxu0 %v3571_v51  ;;  %v2352_v7 = vld [vmem:[%s4556_s5 + $0xd0] sm:$0xff]  ;;  %v3639_v14 = vpack.c.bf16 %v2365_v2, %v2364_v11  ;;  %v2371_v25 = vld [vmem:[%s4556_s5 + $0x168] sm:$0xff] }
 0x16e   : > { %3512 = vmatprep.subr.bf16.mxu1 %v4203_v12  ;;  %v3583_v29 = vpack.c.bf16 %v2353_v24, %v2352_v7  ;;  %v2308_v24 = vld [vmem:[%s4559_s8] ss:$0 sm:$0xff] }
 0x170   : > { %3574 = vmatpush3.bf16.msra.mxu0 %v3571_v51 }
 0x171   : > { %3514 = vmatpush3.bf16.msra.mxu1 %v4203_v12  ;;  %3576 = vmatprep.subr.bf16.mxu0 %v3575_v3  ;;  %v2354_v12 = vld [vmem:[%s4556_s5 + $0xe0] sm:$0xff] }
 0x172   : > { %3516 = vmatprep.subr.bf16.mxu1 %v4213_v16  ;;  %v3587_v33 = vpack.c.bf16 %v2355_v32, %v2354_v12 }
 0x173   : > { %v1739_v46 = vld [vmem:[#allocation2] sm:$0xff]  ;;  %v1740_v6 = vld [vmem:[#allocation2 + $0x8] sm:$0xff] }
 0x174   : > { %3578 = vmatpush3.bf16.msra.mxu0 %v3575_v3  ;;  %v1926_v10 = vld [vmem:[#allocation2 + $0x2] sm:$0xff]  ;;  %v1927_v7 = vld [vmem:[#allocation2 + $0xa] sm:$0xff] }
 0x175   : > { %3518 = vmatpush3.bf16.msra.mxu1 %v4213_v16  ;;  %3580 = vmatprep.subr.bf16.mxu0 %v3579_v13  ;;  %v2356_v16 = vld [vmem:[%s4556_s5 + $0xf0] sm:$0xff] }
 0x176   : > { %3520 = vmatprep.subr.bf16.mxu1 %v4223_v20  ;;  %v3591_v35 = vpack.c.bf16 %v2357_v34, %v2356_v16 }
 0x178   : > { %3582 = vmatpush3.bf16.msra.mxu0 %v3579_v13  ;;  %v3655_v13 = vpack.c.bf16 %v2373_v8, %v2372_v26 }
 0x179   : > { %3522 = vmatpush3.bf16.msra.mxu1 %v4223_v20  ;;  %3584 = vmatprep.subr.bf16.mxu0 %v3583_v29  ;;  %v1741_v20 = vld [vmem:[%s4556_s5] sm:$0xff] }
 0x17a   : > { %3524 = vmatprep.subr.bf16.mxu1 %v4233_v23  ;;  %v3595_v38 = vpack.c.bf16 %v1742_v37, %v1741_v20 }
 0x17c   : > { %3586 = vmatpush3.bf16.msra.mxu0 %v3583_v29  ;;  %v2309_v29 = vld [vmem:[%s4560_s9] ss:$0 sm:$0xff] }
 0x17d   : > { %3526 = vmatpush3.bf16.msra.mxu1 %v4233_v23  ;;  %3588 = vmatprep.subr.bf16.mxu0 %v3587_v33  ;;  %v1743_v23 = vld [vmem:[%s4556_s5 + $0x10] sm:$0xff] }
 0x17e   : > { %3528 = vmatprep.subr.bf16.mxu1 %v4243_v28  ;;  %v3599_v41 = vpack.c.bf16 %v1744_v40, %v1743_v23 }
 0x180   : > { %3590 = vmatpush3.bf16.msra.mxu0 %v3587_v33 }
 0x181   : > { %3530 = vmatpush3.bf16.msra.mxu1 %v4243_v28  ;;  %3592 = vmatprep.subr.bf16.mxu0 %v3591_v35  ;;  %v1745_v28 = vld [vmem:[%s4556_s5 + $0x20] sm:$0xff] }
 0x182   : > { %3532 = vmatprep.subr.bf16.mxu1 %v4253_v18 }
 0x184   : > { %3594 = vmatpush3.bf16.msra.mxu0 %v3591_v35  ;;  %3037 = vmatmul.mubr.f32.vlgmr.msra.gmra.mrb[4].mxu1 %v1447_v21  ;;  %v3647_v21 = vpack.c.bf16 %v2369_v19, %v2368_v17 }
 0x185   : > { %3534 = vmatpush3.bf16.msra.mxu1 %v4253_v18  ;;  %3071 = vmatprep.mubr.f32.mxu1 %v1632_v22  ;;  %v3603_v18 = vpack.c.bf16 %v1746_v44, %v1745_v28  ;;  %v2370_v22 = vld [vmem:[%s4556_s5 + $0x160] sm:$0xff] }
 0x186   : > { %3596 = vmatprep.subr.bf16.mxu0 %v3595_v38  ;;  %3536 = vmatprep.subr.bf16.mxu1 %v4263_v31  ;;  %v3651_v3 = vpack.c.bf16 %v2371_v25, %v2370_v22 }
 0x187   : > { %3107 = vmatmul.mubr.f32.vlgmr.msra.gmra.mrb[4].mxu0 %v4338_v9  ;;  %v2363_v9 = vld [vmem:[%s4556_s5 + $0x128] sm:$0xff] }
 0x188   : > { %3598 = vmatpush3.bf16.msra.mxu0 %v3595_v38  ;;  %3141 = vmatprep.mubr.f32.mxu0 %v1739_v46 }
 0x189   : > { %3538 = vmatpush3.bf16.msra.mxu1 %v4263_v31  ;;  %3600 = vmatprep.subr.bf16.mxu0 %v3599_v41  ;;  %v1749_v31 = vld [vmem:[%s4556_s5 + $0x40] sm:$0xff] }
 0x18a   : > { %3540 = vmatprep.subr.bf16.mxu1 %v4273_v36  ;;  %v3611_v55 = vpack.c.bf16 %v1750_v53, %v1749_v31 }
 0x18c   : > { %3602 = vmatpush3.bf16.msra.mxu0 %v3599_v41 }
 0x18d   : > { %3542 = vmatpush3.bf16.msra.mxu1 %v4273_v36  ;;  %3604 = vmatprep.subr.bf16.mxu0 %v3603_v18  ;;  %v1751_v36 = vld [vmem:[%s4556_s5 + $0x50] sm:$0xff] }
 0x18e   : > { %3544 = vmatprep.subr.bf16.mxu1 %v4283_v39  ;;  %v3615_v57 = vpack.c.bf16 %v1752_v56, %v1751_v36 }
 0x190   : > { %3606 = vmatpush3.bf16.msra.mxu0 %v3603_v18 }
 0x191   : > { %3546 = vmatpush3.bf16.msra.mxu1 %v4283_v39  ;;  %3608 = vmatprep.subr.bf16.mxu0 %v3607_v52  ;;  %v1753_v39 = vld [vmem:[%s4556_s5 + $0x60] sm:$0xff] }
 0x192   : > { %3548 = vmatprep.subr.bf16.mxu1 %v4293_v42  ;;  %v3619_v61 = vpack.c.bf16 %v1754_v59, %v1753_v39 }
 0x194   : > { %3610 = vmatpush3.bf16.msra.mxu0 %v3607_v52  ;;  %v2374_v52 = vld [vmem:[%s4561_s10] ss:$0 sm:$0xff] }
 0x195   : > { %3550 = vmatpush3.bf16.msra.mxu1 %v4293_v42  ;;  %3612 = vmatprep.subr.bf16.mxu0 %v3611_v55  ;;  %v1755_v42 = vld [vmem:[%s4556_s5 + $0x70] sm:$0xff] }
 0x196   : > { %3552 = vmatprep.subr.bf16.mxu1 %v4303_v47  ;;  %v3623_v63 = vpack.c.bf16 %v1756_v62, %v1755_v42 }
 0x198   : > { %3614 = vmatpush3.bf16.msra.mxu0 %v3611_v55  ;;  %v540_v55 = vld [vmem:[%s517_s19 + $0x8] sm:$0xff] }
 0x199   : > { %3554 = vmatpush3.bf16.msra.mxu1 %v4303_v47  ;;  %3616 = vmatprep.subr.bf16.mxu0 %v3615_v57  ;;  %v2358_v47 = vld [vmem:[%s4556_s5 + $0x100] sm:$0xff] }
 0x19a   : > { %3556 = vmatprep.subr.bf16.mxu1 %v4313_v50  ;;  %v3627_v1 = vpack.c.bf16 %v2359_v0, %v2358_v47 }
 0x19c   : > { %3618 = vmatpush3.bf16.msra.mxu0 %v3615_v57  ;;  %v539_v57 = vld [vmem:[%s517_s19] sm:$0xff] }
 0x19d   : > { %3558 = vmatpush3.bf16.msra.mxu1 %v4313_v50  ;;  %3620 = vmatprep.subr.bf16.mxu0 %v3619_v61  ;;  %v2360_v50 = vld [vmem:[%s4556_s5 + $0x110] sm:$0xff] }
 0x19e   : > { %3560 = vmatprep.subr.bf16.mxu1 %v4325_v60  ;;  %v3631_v5 = vpack.c.bf16 %v2361_v54, %v2360_v50 }
 0x1a0   : > { %3622 = vmatpush3.bf16.msra.mxu0 %v3619_v61 }
 0x1a1   : > { %3562 = vmatpush3.bf16.msra.mxu1 %v4325_v60  ;;  %3624 = vmatprep.subr.bf16.mxu0 %v3623_v63  ;;  %v2362_v60 = vld [vmem:[%s4556_s5 + $0x120] sm:$0xff] }
 0x1a2   : > { %v3635_v58 = vpack.c.bf16 %v2363_v9, %v2362_v60 }
 0x1a4   : > { %3626 = vmatpush3.bf16.msra.mxu0 %v3623_v63  ;;  %3072 = vmatmul.mubr.f32.vlgmr.msra.gmra.mrb[4].mxu1 %v4356_v4  ;;  %v2367_v4 = vld [vmem:[%s4556_s5 + $0x148] sm:$0xff] }
 0x1a5   : > { %3628 = vmatprep.subr.bf16.mxu0 %v3627_v1  ;;  %v3643_v51 = vpack.c.bf16 %v2367_v4, %v2366_v15 }
 0x1a7   : > { %3142 = vmatmul.mubr.f32.vlgmr.msra.gmra.mrb[4].mxu0 %v1740_v6 }
 0x1a8   : > { %3630 = vmatpush3.bf16.msra.mxu0 %v3627_v1  ;;  %3176 = vmatprep.mubr.f32.mxu0 %v1926_v10 }
 0x1a9   : > { %3632 = vmatprep.subr.bf16.mxu0 %v3631_v5 }
 0x1ac   : > { %3634 = vmatpush3.bf16.msra.mxu0 %v3631_v5 }
 0x1ad   : > { %3636 = vmatprep.subr.bf16.mxu0 %v3635_v58 }
 0x1b0   : > { %3638 = vmatpush3.bf16.msra.mxu0 %v3635_v58 }
 0x1b1   : > { %3640 = vmatprep.subr.bf16.mxu0 %v3639_v14 }
 0x1b4   : > { %3642 = vmatpush3.bf16.msra.mxu0 %v3639_v14 }
 0x1b5   : > { %3644 = vmatprep.subr.bf16.mxu0 %v3643_v51 }
 0x1b8   : > { %3646 = vmatpush3.bf16.msra.mxu0 %v3643_v51 }
 0x1b9   : > { %3648 = vmatprep.subr.bf16.mxu0 %v3647_v21 }
 0x1bc   : > { %3650 = vmatpush3.bf16.msra.mxu0 %v3647_v21 }
 0x1bd   : > { %3652 = vmatprep.subr.bf16.mxu0 %v3651_v3 }
 0x1c0   : > { %3654 = vmatpush3.bf16.msra.mxu0 %v3651_v3 }
 0x1c1   : > { %3656 = vmatprep.subr.bf16.mxu0 %v3655_v13 }
 0x1c4   : > { %3658 = vmatpush3.bf16.msra.mxu0 %v3655_v13 }
 0x1c7   : > { %3177 = vmatmul.mubr.f32.vlgmr.msra.gmra.mrb[4].mxu0 %v1927_v7 }
 0x23a   : > { %v2968_v12 = vpop.f32.mrb[2].mxu0 }
 0x23b   : > { %v1431_v32 = vmul.f32 %v2968_v12, %v2308_v24  ;;  %v1413_v33 = vpop.f32.mrb[3].mxu0 }
 0x23c   : > { %v1430_v16 = vmul.f32 %v2308_v24, %v1413_v33 }
 0x23d   : > { %v1439_v34 = vadd.f32 %v2309_v29, %v1431_v32 }
 0x23e   : > { %v1438_v35 = vadd.f32 %v2309_v29, %v1430_v16 }
 0x23f   : > { %v1441_v20 = vadd.f32 %v1439_v34, %v3874_v30 }
 0x240   : > { %v1440_v37 = vadd.f32 %v1438_v35, %v3866_v27 }
 0x241   : > { %v1443_v38 = vmax.f32 %v1441_v20, 0.0 }
 0x242   : > { %v1442_v23 = vmax.f32 %v1440_v37, 0.0 }
 0x243   : > { %2043 = vst [vmem:[%s522_s26 + $0x8] sm:$0xff] %v1443_v38 }
 0x244   : > { %2042 = vst [vmem:[%s522_s26] sm:$0xff] %v1442_v23 }
 0x277   : > { %v3073_v40 = vpop.f32.mrb[4].mxu1 }
 0x278   : > { %v1728_v41 = vmul.f32 %v3073_v40, %v2308_v24  ;;  %v1716_v28 = vpop.f32.mrb[5].mxu1 }
 0x279   : > { %v1727_v44 = vmul.f32 %v2308_v24, %v1716_v28 }
 0x27a   : > { %v1730_v46 = vadd.f32 %v2309_v29, %v1728_v41 }
 0x27b   : > { %v1729_v18 = vadd.f32 %v2309_v29, %v1727_v44 }
 0x27c   : > { %v1732_v48 = vadd.f32 %v1730_v46, %v3925_v45  ;;  %v2375_v45 = vld [vmem:[%s4562_s11] ss:$0 sm:$0xff] }
 0x27d   : > { %v1731_v30 = vadd.f32 %v1729_v18, %v3923_v43 }
 0x27e   : > { %v1734_v27 = vmax.f32 %v1732_v48, 0.0 }
 0x27f   : > { %v1733_v49 = vmax.f32 %v1731_v30, 0.0 }
 0x280   : > { %2045 = vst [vmem:[%s527_s15 + $0x8] sm:$0xff] %v1734_v27 }
 0x281   : > { %2044 = vst [vmem:[%s527_s15] sm:$0xff] %v1733_v49 }
 0x29a   : > { %v3178_v31 = vpop.f32.mrb[4].mxu0 }
 0x29b   : > { %v2029_v53 = vmul.f32 %v3178_v31, %v2374_v52  ;;  %v2011_v43 = vpop.f32.mrb[5].mxu0 }
 0x29c   : > { %v2028_v36 = vmul.f32 %v2374_v52, %v2011_v43 }
 0x29d   : > { %v2037_v56 = vadd.f32 %v2375_v45, %v2029_v53 }
 0x29e   : > { %v2036_v39 = vadd.f32 %v2375_v45, %v2028_v36 }
 0x29f   : > { %v2039_v59 = vadd.f32 %v2037_v56, %v540_v55 }
 0x2a0   : > { %v2038_v61 = vadd.f32 %v2036_v39, %v539_v57 }
 0x2a1   : > { %v2041_v42 = vmax.f32 %v2039_v59, 0.0 }
 0x2a2   : > { %v2040_v62 = vmax.f32 %v2038_v61, 0.0 }
 0x2a3   : > { %2047 = vst [vmem:[%s532_s24 + $0x8] sm:$0xff] %v2041_v42 }
 0x2a4   : > { %2046 = vst [vmem:[%s532_s24] sm:$0xff] %v2040_v62 }
 0x2a5 PF: > { %s25_s29 = sadd.s32 1, %s3694_s29  }
 0x2a6   : > { %p22_p4 = scmp.ge.s32.totalorder %s25_s29, 4  }
 0x2a8   :  { %24 = sbr.rel (!%p22_p4) target bundleno = 1 (0x1), region = 134 }

</bundles_post_ra>
